<compile_context>
chip_gen: v7x
topology: tpu7x:2x2x1
jax: 0.10.0
libtpu: 0.0.40
codegen_flags: <defaults>
</compile_context>

<pallas_src>
import functools
import math

import jax
import jax.numpy as jnp
from jax.experimental import pallas as pl
from jax.experimental.pallas import tpu as pltpu


def _cdiv(a, b):
    return -(-a // b)


def _round_up(x, m):
    return _cdiv(x, m) * m


def _recip(x):
    # EUP approximate reciprocal (otherwise-idle slot) + one Newton-Raphson
    # refinement step -> ~1e-7 relative error (meets the rtol=1e-4 check).
    r = pl.reciprocal(x, approx=True)
    return r * (2.0 - x * r)


def _onestep_kernel(p_ref, th_ref, tx_ref, rx_ref, out_ref, *,
                    K, L, Ml, M, N, sigma2, p_max):
    KN, KM, LM = K * N, K * M, L * Ml
    inv_sqrt2 = 1.0 / math.sqrt(2.0)

    # Theta rows (only 2*LM small planes) stay resident.
    thr = [th_ref[2 * l] for l in range(LM)]
    thi = [th_ref[2 * l + 1] for l in range(LM)]

    # Rx @ diag(Theta): load Rx rows right where they are consumed.
    rt_r, rt_i = [], []
    for m in range(KM):
        rr, ri = [], []
        for l in range(LM):
            xr = rx_ref[2 * (m * LM + l)]
            xi = rx_ref[2 * (m * LM + l) + 1]
            rr.append(xr * thr[l] - xi * thi[l])
            ri.append(xr * thi[l] + xi * thr[l])
        rt_r.append(rr)
        rt_i.append(ri)

    p_sq = [None] * KN
    h_sq = [[None] * KN for _ in range(KM)]   # needed in full (p_out / beta)
    h_diag_r = [None] * KN                    # only diagonals of h are needed
    h_diag_i = [None] * KN
    gain_diag = [None] * KN
    gain_rowsum = [None] * KM

    # h = (Rx Theta) @ Tx : unrolled complex MAC over LM.  Tx rows are loaded
    # in-loop; h_gain is fused into its row-sum (no (KM,KN) h_gain planes).
    for n in range(KN):
        pn = p_ref[n]
        p_sq[n] = pn * pn
        txr_n = [tx_ref[2 * (l * KN + n)] for l in range(LM)]
        txi_n = [tx_ref[2 * (l * KN + n) + 1] for l in range(LM)]
        for m in range(KM):
            ar = rt_r[m][0] * txr_n[0] - rt_i[m][0] * txi_n[0]
            ai = rt_r[m][0] * txi_n[0] + rt_i[m][0] * txr_n[0]
            for l in range(1, LM):
                ar = ar + rt_r[m][l] * txr_n[l] - rt_i[m][l] * txi_n[l]
                ai = ai + rt_r[m][l] * txi_n[l] + rt_i[m][l] * txr_n[l]
            hs = ar * ar + ai * ai
            h_sq[m][n] = hs
            g = p_sq[n] * hs
            gain_rowsum[m] = g if gain_rowsum[m] is None else gain_rowsum[m] + g
            if m == n:                        # KM == KN (M == N asserted)
                h_diag_r[n] = ar
                h_diag_i[n] = ai
                gain_diag[n] = g

    # mu, alpha^2 (alpha_sq computed directly: no sqrt + square round trip).
    mu, one_plus_mu, alpha_sq = [], [], []
    for k in range(KN):
        num = gain_diag[k]
        tot = gain_rowsum[k] + sigma2
        den = tot - num                       # = off-diagonal sum + sigma2
        mu_k = num * _recip(den)
        opm = 1.0 + mu_k
        inv_tot = _recip(tot)
        mu.append(mu_k)
        one_plus_mu.append(opm)
        alpha_sq.append(0.5 * opm * num * inv_tot * inv_tot)

    # p_out = min(p_max, sqrt(0.5*num3) / col)  (== sqrt(num3/(2*col^2)))
    p_out, p_out_sq = [], []
    for n in range(KN):
        num3 = one_plus_mu[n] * alpha_sq[n] * h_sq[n][n]
        col = alpha_sq[0] * h_sq[0][n]
        for m in range(1, KM):
            col = col + alpha_sq[m] * h_sq[m][n]
        # Guard: zero-padded batch lanes have col == 0 (and num3 == 0), which
        # would be 0/0 -> NaN.  The guard keeps those (discarded) lanes finite.
        col = jnp.where(col > 0.0, col, 1.0)
        po = jnp.minimum(jnp.float32(p_max), jnp.sqrt(0.5 * num3) * _recip(col))
        p_out.append(po)
        p_out_sq.append(po * po)

    # beta
    beta_r, beta_i = [], []
    for k in range(KN):
        row = p_out_sq[0] * h_sq[k][0]
        for n in range(1, KN):
            row = row + p_out_sq[n] * h_sq[k][n]
        sc = (jnp.sqrt(one_plus_mu[k]) * p_out[k] * inv_sqrt2
              * _recip(row + sigma2))
        beta_r.append(sc * h_diag_r[k])
        beta_i.append(sc * h_diag_i[k])

    # Single merged lane-dense output: rows = [p_out | mu | beta_r | beta_i].
    for i, v in enumerate(p_out + mu + beta_r + beta_i):
        out_ref[i] = v


def onestep_pallas(p, Theta, Tx, Rx, *, sigma2=1.0, p_max=1.0,
                   Ksize=(3, 1, 2, 1, 1), block_batch=32768,
                   vmem_limit_bytes=48 * 1024 * 1024):
    """Returns (p_out, theta_out, mu, beta_real, beta_imag)."""
    K, L, Ml, M, N = Ksize
    assert M == N, "diagonal logic (as in the reference module) assumes K*M == K*N"
    B = Tx.shape[0]
    KM, KN, LM = K * M, K * N, L * Ml
    f32 = jnp.float32

    # --- Single relayout pass per tensor: pad the batch axis FIRST (so the pad
    # fuses into the transpose copy), pad only to a lane multiple (128), and
    # put the batch last.
    B_pad = _round_up(B, 128)
    n_lane_rows = B_pad // 128
    pad = B_pad - B

    def pad_batch(x):
        x = x.astype(f32)
        if pad:
            x = jnp.pad(x, ((0, pad),) + ((0, 0),) * (x.ndim - 1))
        return x

    p_p, th_p, tx_p, rx_p = (pad_batch(a) for a in (p, Theta, Tx, Rx))

    # Tx: (B,L,K,Ml,N,2) -> (L,Ml,K,N,2,B); row = (lm*KN+kn)*2+c
    tx = jnp.transpose(tx_p, (1, 3, 2, 4, 5, 0)).reshape(LM * KN * 2, n_lane_rows, 128)
    # Rx: (B,K,L,M,Ml,2) -> (K,M,L,Ml,2,B); row = (km*LM+lm)*2+c
    rx = jnp.transpose(rx_p, (1, 3, 2, 4, 5, 0)).reshape(KM * LM * 2, n_lane_rows, 128)
    # Theta: (B,L,Ml,2) -> (LM,2,B);        row = lm*2+c
    th = jnp.transpose(th_p.reshape(B_pad, LM, 2), (1, 2, 0)).reshape(LM * 2, n_lane_rows, 128)
    # p: (B,KN) -> (KN,B)
    pv = jnp.transpose(p_p, (1, 0)).reshape(KN, n_lane_rows, 128)

    # --- Batch tile: S sublane rows x 128 lanes = S*128 samples per grid step.
    # Default 32K samples/step (~23 MiB incl. double buffering) fits v5e/v6e
    # (128 MiB VMEM) and v7x (64 MiB) under the explicit 48 MiB limit.
    S_target = max(8, _round_up(int(block_batch), 1024) // 128)
    if n_lane_rows <= 8:
        S = n_lane_rows                     # single full-extent block
    else:
        # Keep >= 2 grid steps so v7x's two TensorCores both get work.
        S = min(S_target, _round_up(_cdiv(n_lane_rows, 2), 8))
    grid = (_cdiv(n_lane_rows, S),)         # ragged last block is masked

    def spec(rows):
        return pl.BlockSpec((rows, S, 128), lambda g: (0, g, 0))

    kernel = functools.partial(_onestep_kernel, K=K, L=L, Ml=Ml, M=M, N=N,
                               sigma2=float(sigma2), p_max=float(p_max))

    out = pl.pallas_call(
        kernel,
        out_shape=jax.ShapeDtypeStruct((4 * KN, n_lane_rows, 128), f32),
        grid=grid,
        in_specs=[spec(KN), spec(2 * LM), spec(2 * LM * KN), spec(2 * KM * LM)],
        out_specs=spec(4 * KN),
        compiler_params=pltpu.CompilerParams(
            dimension_semantics=("parallel",),
            vmem_limit_bytes=int(vmem_limit_bytes)),
    )(pv, th, tx, rx)

    # One transposed-copy pass over the merged output, then cheap column slices.
    out_t = out.reshape(4 * KN, B_pad).T[:B]     # (B, 4*KN)
    p_out = out_t[:, 0 * KN:1 * KN]
    mu = out_t[:, 1 * KN:2 * KN]
    beta_r = out_t[:, 2 * KN:3 * KN]
    beta_i = out_t[:, 3 * KN:4 * KN]

    # TODO(synk): cvx_opt is a per-sample CVXPY SOCP solve; no Pallas
    # equivalent, so theta_out is returned as zeros (its inputs p_out/mu/beta
    # are computed above in the kernel).
    theta_out = jnp.zeros((B, L, Ml, 2), jnp.float32)
    return p_out, theta_out, mu, beta_r, beta_i


def onestep_ref(p, Theta, Tx, Rx, *, sigma2=1.0, p_max=1.0,
                Ksize=(3, 1, 2, 1, 1)):
    """Pure-JAX reference mirroring the PyTorch forward (up to cvx_opt)."""
    K, L, Ml, M, N = Ksize
    B = Tx.shape[0]
    KM, KN, LM = K * M, K * N, L * Ml
    hp = jax.lax.Precision.HIGHEST

    Tx_m = jnp.transpose(Tx, (0, 1, 3, 2, 4, 5)).reshape(B, LM, KN, 2)
    Rx_m = jnp.transpose(Rx, (0, 1, 3, 2, 4, 5)).reshape(B, KM, LM, 2)
    Th_m = Theta.reshape(B, LM, 2)
    txr, txi = Tx_m[..., 0], Tx_m[..., 1]
    rxr, rxi = Rx_m[..., 0], Rx_m[..., 1]
    thr, thi = Th_m[..., 0], Th_m[..., 1]

    rt_r = rxr * thr[:, None, :] - rxi * thi[:, None, :]
    rt_i = rxr * thi[:, None, :] + rxi * thr[:, None, :]
    mm = lambda a, b: jnp.einsum('bij,bjk->bik', a, b, precision=hp)
    h_r = mm(rt_r, txr) - mm(rt_i, txi)
    h_i = mm(rt_r, txi) + mm(rt_i, txr)
    h_sq = h_r ** 2 + h_i ** 2

    h_gain = (p ** 2)[:, None, :] * h_sq
    num = jnp.diagonal(h_gain, axis1=1, axis2=2)
    den = jnp.sum(h_gain, axis=2) - num + sigma2
    mu = num / den
    alpha = (jnp.sqrt((1 + mu) * num)
             / (jnp.sum(h_gain, axis=2) + sigma2) / math.sqrt(2.0))
    num3 = (1 + mu) * alpha ** 2 * jnp.diagonal(h_sq, axis1=1, axis2=2)
    den3 = jnp.sum((alpha ** 2)[:, :, None] * h_sq, axis=1) ** 2
    p_out = jnp.minimum(jnp.full_like(p, p_max), jnp.sqrt(num3 / (2 * den3)))
    num_r = (1.0 / math.sqrt(2.0)) * jnp.sqrt(1 + mu) * p_out * \
        jnp.diagonal(h_r, axis1=1, axis2=2)
    num_i = (1.0 / math.sqrt(2.0)) * jnp.sqrt(1 + mu) * p_out * \
        jnp.diagonal(h_i, axis1=1, axis2=2)
    h_gain2 = (p_out ** 2)[:, None, :] * h_sq
    den4 = jnp.sum(h_gain2, axis=2) + sigma2
    return p_out, mu, num_r / den4, num_i / den4


if __name__ == "__main__":
    # Ksize = [K, L, Ml, M, N] = [3, 1, 2, 1, 1]  (module default)
    K, L, Ml, M, N = 3, 1, 2, 1, 1

    def make_inputs(B, seed):
        key = jax.random.PRNGKey(seed)
        k1, k2, k3, k4 = jax.random.split(key, 4)
        p = jnp.abs(jax.random.normal(k1, (B, K * N), jnp.float32))
        ang = jax.random.uniform(k2, (B, L, Ml), jnp.float32,
                                 minval=0.0, maxval=2.0 * math.pi)
        Theta = jnp.stack([jnp.cos(ang), jnp.sin(ang)], axis=-1)  # (B,L,Ml,2)
        Tx = jax.random.normal(k3, (B, L, K, Ml, N, 2), jnp.float32)
        Rx = jax.random.normal(k4, (B, K, L, M, Ml, 2), jnp.float32)
        return p, Theta, Tx, Rx

    # Two cases: tiny batch (single full-extent block) and a batch that
    # exercises the >=2-step grid, the ragged (masked) last block, and the
    # zero-padded lane guard.
    for B in (4, 2300):
        p, Theta, Tx, Rx = make_inputs(B, 0)
        p_out, theta_out, mu, beta_r, beta_i = onestep_pallas(
            p, Theta, Tx, Rx, sigma2=1.0, p_max=1.0, Ksize=(K, L, Ml, M, N))
        jax.block_until_ready((p_out, theta_out, mu, beta_r, beta_i))

        p_ref, mu_ref, br_ref, bi_ref = onestep_ref(
            p, Theta, Tx, Rx, sigma2=1.0, p_max=1.0, Ksize=(K, L, Ml, M, N))

        assert p_out.shape == (B, K * N)
        assert theta_out.shape == (B, L, Ml, 2)
        for got, ref in ((p_out, p_ref), (mu, mu_ref),
                         (beta_r, br_ref), (beta_i, bi_ref)):
            assert jnp.allclose(got, ref, rtol=1e-4, atol=1e-5), (B, got, ref)
        assert not bool(jnp.any(jnp.isnan(p_out))) and not bool(jnp.any(jnp.isnan(beta_r)))

    print("KERNEL_OK")
</pallas_src>

<mosaic_0001>
module attributes {stable_mosaic.version = 11 : i64} {
  func.func @_onestep_kernel(%arg0: i32, %arg1: memref<3x1x128xf32, #tpu.memory_space<vmem>>, %arg2: memref<4x1x128xf32, #tpu.memory_space<vmem>>, %arg3: memref<12x1x128xf32, #tpu.memory_space<vmem>>, %arg4: memref<12x1x128xf32, #tpu.memory_space<vmem>>, %arg5: memref<12x1x128xf32, #tpu.memory_space<vmem>>) attributes {dimension_semantics = [#tpu.dimension_semantics<parallel>], iteration_bounds = array<i64: 1>, scalar_prefetch = 0 : i64, scratch_operands = 0 : i64, tpu.core_type = #tpu.core_type<tc>, window_params = [{transform_indices = @transform_0, window_bounds = array<i64: 3, 1, 128>}, {transform_indices = @transform_1, window_bounds = array<i64: 4, 1, 128>}, {transform_indices = @transform_2, window_bounds = array<i64: 12, 1, 128>}, {transform_indices = @transform_3, window_bounds = array<i64: 12, 1, 128>}, {transform_indices = @transform_4, window_bounds = array<i64: 12, 1, 128>}]} {
    %c0 = arith.constant 0 : index
    %c0_0 = arith.constant 0 : index
    %c0_1 = arith.constant 0 : index
    %0 = vector.load %arg2[%c0, %c0_0, %c0_1] : memref<4x1x128xf32, #tpu.memory_space<vmem>>, vector<1x1x128xf32>
    %1 = vector.shape_cast %0 : vector<1x1x128xf32> to vector<1x128xf32>
    %c2 = arith.constant 2 : index
    %c0_2 = arith.constant 0 : index
    %c0_3 = arith.constant 0 : index
    %2 = vector.load %arg2[%c2, %c0_2, %c0_3] : memref<4x1x128xf32, #tpu.memory_space<vmem>>, vector<1x1x128xf32>
    %3 = vector.shape_cast %2 : vector<1x1x128xf32> to vector<1x128xf32>
    %c1 = arith.constant 1 : index
    %c0_4 = arith.constant 0 : index
    %c0_5 = arith.constant 0 : index
    %4 = vector.load %arg2[%c1, %c0_4, %c0_5] : memref<4x1x128xf32, #tpu.memory_space<vmem>>, vector<1x1x128xf32>
    %5 = vector.shape_cast %4 : vector<1x1x128xf32> to vector<1x128xf32>
    %c3 = arith.constant 3 : index
    %c0_6 = arith.constant 0 : index
    %c0_7 = arith.constant 0 : index
    %6 = vector.load %arg2[%c3, %c0_6, %c0_7] : memref<4x1x128xf32, #tpu.memory_space<vmem>>, vector<1x1x128xf32>
    %7 = vector.shape_cast %6 : vector<1x1x128xf32> to vector<1x128xf32>
    %c0_8 = arith.constant 0 : index
    %c0_9 = arith.constant 0 : index
    %c0_10 = arith.constant 0 : index
    %8 = vector.load %arg4[%c0_8, %c0_9, %c0_10] : memref<12x1x128xf32, #tpu.memory_space<vmem>>, vector<1x1x128xf32>
    %9 = vector.shape_cast %8 : vector<1x1x128xf32> to vector<1x128xf32>
    %c1_11 = arith.constant 1 : index
    %c0_12 = arith.constant 0 : index
    %c0_13 = arith.constant 0 : index
    %10 = vector.load %arg4[%c1_11, %c0_12, %c0_13] : memref<12x1x128xf32, #tpu.memory_space<vmem>>, vector<1x1x128xf32>
    %11 = vector.shape_cast %10 : vector<1x1x128xf32> to vector<1x128xf32>
    %12 = arith.mulf %9, %1 : vector<1x128xf32>
    %13 = arith.mulf %11, %5 : vector<1x128xf32>
    %14 = arith.subf %12, %13 : vector<1x128xf32>
    %15 = arith.mulf %9, %5 : vector<1x128xf32>
    %16 = arith.mulf %11, %1 : vector<1x128xf32>
    %17 = arith.addf %15, %16 : vector<1x128xf32>
    %c2_14 = arith.constant 2 : index
    %c0_15 = arith.constant 0 : index
    %c0_16 = arith.constant 0 : index
    %18 = vector.load %arg4[%c2_14, %c0_15, %c0_16] : memref<12x1x128xf32, #tpu.memory_space<vmem>>, vector<1x1x128xf32>
    %19 = vector.shape_cast %18 : vector<1x1x128xf32> to vector<1x128xf32>
    %c3_17 = arith.constant 3 : index
    %c0_18 = arith.constant 0 : index
    %c0_19 = arith.constant 0 : index
    %20 = vector.load %arg4[%c3_17, %c0_18, %c0_19] : memref<12x1x128xf32, #tpu.memory_space<vmem>>, vector<1x1x128xf32>
    %21 = vector.shape_cast %20 : vector<1x1x128xf32> to vector<1x128xf32>
    %22 = arith.mulf %19, %3 : vector<1x128xf32>
    %23 = arith.mulf %21, %7 : vector<1x128xf32>
    %24 = arith.subf %22, %23 : vector<1x128xf32>
    %25 = arith.mulf %19, %7 : vector<1x128xf32>
    %26 = arith.mulf %21, %3 : vector<1x128xf32>
    %27 = arith.addf %25, %26 : vector<1x128xf32>
    %c4 = arith.constant 4 : index
    %c0_20 = arith.constant 0 : index
    %c0_21 = arith.constant 0 : index
    %28 = vector.load %arg4[%c4, %c0_20, %c0_21] : memref<12x1x128xf32, #tpu.memory_space<vmem>>, vector<1x1x128xf32>
    %29 = vector.shape_cast %28 : vector<1x1x128xf32> to vector<1x128xf32>
    %c5 = arith.constant 5 : index
    %c0_22 = arith.constant 0 : index
    %c0_23 = arith.constant 0 : index
    %30 = vector.load %arg4[%c5, %c0_22, %c0_23] : memref<12x1x128xf32, #tpu.memory_space<vmem>>, vector<1x1x128xf32>
    %31 = vector.shape_cast %30 : vector<1x1x128xf32> to vector<1x128xf32>
    %32 = arith.mulf %29, %1 : vector<1x128xf32>
    %33 = arith.mulf %31, %5 : vector<1x128xf32>
    %34 = arith.subf %32, %33 : vector<1x128xf32>
    %35 = arith.mulf %29, %5 : vector<1x128xf32>
    %36 = arith.mulf %31, %1 : vector<1x128xf32>
    %37 = arith.addf %35, %36 : vector<1x128xf32>
    %c6 = arith.constant 6 : index
    %c0_24 = arith.constant 0 : index
    %c0_25 = arith.constant 0 : index
    %38 = vector.load %arg4[%c6, %c0_24, %c0_25] : memref<12x1x128xf32, #tpu.memory_space<vmem>>, vector<1x1x128xf32>
    %39 = vector.shape_cast %38 : vector<1x1x128xf32> to vector<1x128xf32>
    %c7 = arith.constant 7 : index
    %c0_26 = arith.constant 0 : index
    %c0_27 = arith.constant 0 : index
    %40 = vector.load %arg4[%c7, %c0_26, %c0_27] : memref<12x1x128xf32, #tpu.memory_space<vmem>>, vector<1x1x128xf32>
    %41 = vector.shape_cast %40 : vector<1x1x128xf32> to vector<1x128xf32>
    %42 = arith.mulf %39, %3 : vector<1x128xf32>
    %43 = arith.mulf %41, %7 : vector<1x128xf32>
    %44 = arith.subf %42, %43 : vector<1x128xf32>
    %45 = arith.mulf %39, %7 : vector<1x128xf32>
    %46 = arith.mulf %41, %3 : vector<1x128xf32>
    %47 = arith.addf %45, %46 : vector<1x128xf32>
    %c8 = arith.constant 8 : index
    %c0_28 = arith.constant 0 : index
    %c0_29 = arith.constant 0 : index
    %48 = vector.load %arg4[%c8, %c0_28, %c0_29] : memref<12x1x128xf32, #tpu.memory_space<vmem>>, vector<1x1x128xf32>
    %49 = vector.shape_cast %48 : vector<1x1x128xf32> to vector<1x128xf32>
    %c9 = arith.constant 9 : index
    %c0_30 = arith.constant 0 : index
    %c0_31 = arith.constant 0 : index
    %50 = vector.load %arg4[%c9, %c0_30, %c0_31] : memref<12x1x128xf32, #tpu.memory_space<vmem>>, vector<1x1x128xf32>
    %51 = vector.shape_cast %50 : vector<1x1x128xf32> to vector<1x128xf32>
    %52 = arith.mulf %49, %1 : vector<1x128xf32>
    %53 = arith.mulf %51, %5 : vector<1x128xf32>
    %54 = arith.subf %52, %53 : vector<1x128xf32>
    %55 = arith.mulf %49, %5 : vector<1x128xf32>
    %56 = arith.mulf %51, %1 : vector<1x128xf32>
    %57 = arith.addf %55, %56 : vector<1x128xf32>
    %c10 = arith.constant 10 : index
    %c0_32 = arith.constant 0 : index
    %c0_33 = arith.constant 0 : index
    %58 = vector.load %arg4[%c10, %c0_32, %c0_33] : memref<12x1x128xf32, #tpu.memory_space<vmem>>, vector<1x1x128xf32>
    %59 = vector.shape_cast %58 : vector<1x1x128xf32> to vector<1x128xf32>
    %c11 = arith.constant 11 : index
    %c0_34 = arith.constant 0 : index
    %c0_35 = arith.constant 0 : index
    %60 = vector.load %arg4[%c11, %c0_34, %c0_35] : memref<12x1x128xf32, #tpu.memory_space<vmem>>, vector<1x1x128xf32>
    %61 = vector.shape_cast %60 : vector<1x1x128xf32> to vector<1x128xf32>
    %62 = arith.mulf %59, %3 : vector<1x128xf32>
    %63 = arith.mulf %61, %7 : vector<1x128xf32>
    %64 = arith.subf %62, %63 : vector<1x128xf32>
    %65 = arith.mulf %59, %7 : vector<1x128xf32>
    %66 = arith.mulf %61, %3 : vector<1x128xf32>
    %67 = arith.addf %65, %66 : vector<1x128xf32>
    %c0_36 = arith.constant 0 : index
    %c0_37 = arith.constant 0 : index
    %c0_38 = arith.constant 0 : index
    %68 = vector.load %arg1[%c0_36, %c0_37, %c0_38] : memref<3x1x128xf32, #tpu.memory_space<vmem>>, vector<1x1x128xf32>
    %69 = vector.shape_cast %68 : vector<1x1x128xf32> to vector<1x128xf32>
    %70 = arith.mulf %69, %69 : vector<1x128xf32>
    %c0_39 = arith.constant 0 : index
    %c0_40 = arith.constant 0 : index
    %c0_41 = arith.constant 0 : index
    %71 = vector.load %arg3[%c0_39, %c0_40, %c0_41] : memref<12x1x128xf32, #tpu.memory_space<vmem>>, vector<1x1x128xf32>
    %72 = vector.shape_cast %71 : vector<1x1x128xf32> to vector<1x128xf32>
    %c6_42 = arith.constant 6 : index
    %c0_43 = arith.constant 0 : index
    %c0_44 = arith.constant 0 : index
    %73 = vector.load %arg3[%c6_42, %c0_43, %c0_44] : memref<12x1x128xf32, #tpu.memory_space<vmem>>, vector<1x1x128xf32>
    %74 = vector.shape_cast %73 : vector<1x1x128xf32> to vector<1x128xf32>
    %c1_45 = arith.constant 1 : index
    %c0_46 = arith.constant 0 : index
    %c0_47 = arith.constant 0 : index
    %75 = vector.load %arg3[%c1_45, %c0_46, %c0_47] : memref<12x1x128xf32, #tpu.memory_space<vmem>>, vector<1x1x128xf32>
    %76 = vector.shape_cast %75 : vector<1x1x128xf32> to vector<1x128xf32>
    %c7_48 = arith.constant 7 : index
    %c0_49 = arith.constant 0 : index
    %c0_50 = arith.constant 0 : index
    %77 = vector.load %arg3[%c7_48, %c0_49, %c0_50] : memref<12x1x128xf32, #tpu.memory_space<vmem>>, vector<1x1x128xf32>
    %78 = vector.shape_cast %77 : vector<1x1x128xf32> to vector<1x128xf32>
    %79 = arith.mulf %14, %72 : vector<1x128xf32>
    %80 = arith.mulf %17, %76 : vector<1x128xf32>
    %81 = arith.subf %79, %80 : vector<1x128xf32>
    %82 = arith.mulf %14, %76 : vector<1x128xf32>
    %83 = arith.mulf %17, %72 : vector<1x128xf32>
    %84 = arith.addf %82, %83 : vector<1x128xf32>
    %85 = arith.mulf %24, %74 : vector<1x128xf32>
    %86 = arith.addf %81, %85 : vector<1x128xf32>
    %87 = arith.mulf %27, %78 : vector<1x128xf32>
    %88 = arith.subf %86, %87 : vector<1x128xf32>
    %89 = arith.mulf %24, %78 : vector<1x128xf32>
    %90 = arith.addf %84, %89 : vector<1x128xf32>
    %91 = arith.mulf %27, %74 : vector<1x128xf32>
    %92 = arith.addf %90, %91 : vector<1x128xf32>
    %93 = arith.mulf %88, %88 : vector<1x128xf32>
    %94 = arith.mulf %92, %92 : vector<1x128xf32>
    %95 = arith.addf %93, %94 : vector<1x128xf32>
    %96 = arith.mulf %70, %95 : vector<1x128xf32>
    %97 = arith.mulf %34, %72 : vector<1x128xf32>
    %98 = arith.mulf %37, %76 : vector<1x128xf32>
    %99 = arith.subf %97, %98 : vector<1x128xf32>
    %100 = arith.mulf %34, %76 : vector<1x128xf32>
    %101 = arith.mulf %37, %72 : vector<1x128xf32>
    %102 = arith.addf %100, %101 : vector<1x128xf32>
    %103 = arith.mulf %44, %74 : vector<1x128xf32>
    %104 = arith.addf %99, %103 : vector<1x128xf32>
    %105 = arith.mulf %47, %78 : vector<1x128xf32>
    %106 = arith.subf %104, %105 : vector<1x128xf32>
    %107 = arith.mulf %44, %78 : vector<1x128xf32>
    %108 = arith.addf %102, %107 : vector<1x128xf32>
    %109 = arith.mulf %47, %74 : vector<1x128xf32>
    %110 = arith.addf %108, %109 : vector<1x128xf32>
    %111 = arith.mulf %106, %106 : vector<1x128xf32>
    %112 = arith.mulf %110, %110 : vector<1x128xf32>
    %113 = arith.addf %111, %112 : vector<1x128xf32>
    %114 = arith.mulf %70, %113 : vector<1x128xf32>
    %115 = arith.mulf %54, %72 : vector<1x128xf32>
    %116 = arith.mulf %57, %76 : vector<1x128xf32>
    %117 = arith.subf %115, %116 : vector<1x128xf32>
    %118 = arith.mulf %54, %76 : vector<1x128xf32>
    %119 = arith.mulf %57, %72 : vector<1x128xf32>
    %120 = arith.addf %118, %119 : vector<1x128xf32>
    %121 = arith.mulf %64, %74 : vector<1x128xf32>
    %122 = arith.addf %117, %121 : vector<1x128xf32>
    %123 = arith.mulf %67, %78 : vector<1x128xf32>
    %124 = arith.subf %122, %123 : vector<1x128xf32>
    %125 = arith.mulf %64, %78 : vector<1x128xf32>
    %126 = arith.addf %120, %125 : vector<1x128xf32>
    %127 = arith.mulf %67, %74 : vector<1x128xf32>
    %128 = arith.addf %126, %127 : vector<1x128xf32>
    %129 = arith.mulf %124, %124 : vector<1x128xf32>
    %130 = arith.mulf %128, %128 : vector<1x128xf32>
    %131 = arith.addf %129, %130 : vector<1x128xf32>
    %132 = arith.mulf %70, %131 : vector<1x128xf32>
    %c1_51 = arith.constant 1 : index
    %c0_52 = arith.constant 0 : index
    %c0_53 = arith.constant 0 : index
    %133 = vector.load %arg1[%c1_51, %c0_52, %c0_53] : memref<3x1x128xf32, #tpu.memory_space<vmem>>, vector<1x1x128xf32>
    %134 = vector.shape_cast %133 : vector<1x1x128xf32> to vector<1x128xf32>
    %135 = arith.mulf %134, %134 : vector<1x128xf32>
    %c2_54 = arith.constant 2 : index
    %c0_55 = arith.constant 0 : index
    %c0_56 = arith.constant 0 : index
    %136 = vector.load %arg3[%c2_54, %c0_55, %c0_56] : memref<12x1x128xf32, #tpu.memory_space<vmem>>, vector<1x1x128xf32>
    %137 = vector.shape_cast %136 : vector<1x1x128xf32> to vector<1x128xf32>
    %c8_57 = arith.constant 8 : index
    %c0_58 = arith.constant 0 : index
    %c0_59 = arith.constant 0 : index
    %138 = vector.load %arg3[%c8_57, %c0_58, %c0_59] : memref<12x1x128xf32, #tpu.memory_space<vmem>>, vector<1x1x128xf32>
    %139 = vector.shape_cast %138 : vector<1x1x128xf32> to vector<1x128xf32>
    %c3_60 = arith.constant 3 : index
    %c0_61 = arith.constant 0 : index
    %c0_62 = arith.constant 0 : index
    %140 = vector.load %arg3[%c3_60, %c0_61, %c0_62] : memref<12x1x128xf32, #tpu.memory_space<vmem>>, vector<1x1x128xf32>
    %141 = vector.shape_cast %140 : vector<1x1x128xf32> to vector<1x128xf32>
    %c9_63 = arith.constant 9 : index
    %c0_64 = arith.constant 0 : index
    %c0_65 = arith.constant 0 : index
    %142 = vector.load %arg3[%c9_63, %c0_64, %c0_65] : memref<12x1x128xf32, #tpu.memory_space<vmem>>, vector<1x1x128xf32>
    %143 = vector.shape_cast %142 : vector<1x1x128xf32> to vector<1x128xf32>
    %144 = arith.mulf %14, %137 : vector<1x128xf32>
    %145 = arith.mulf %17, %141 : vector<1x128xf32>
    %146 = arith.subf %144, %145 : vector<1x128xf32>
    %147 = arith.mulf %14, %141 : vector<1x128xf32>
    %148 = arith.mulf %17, %137 : vector<1x128xf32>
    %149 = arith.addf %147, %148 : vector<1x128xf32>
    %150 = arith.mulf %24, %139 : vector<1x128xf32>
    %151 = arith.addf %146, %150 : vector<1x128xf32>
    %152 = arith.mulf %27, %143 : vector<1x128xf32>
    %153 = arith.subf %151, %152 : vector<1x128xf32>
    %154 = arith.mulf %24, %143 : vector<1x128xf32>
    %155 = arith.addf %149, %154 : vector<1x128xf32>
    %156 = arith.mulf %27, %139 : vector<1x128xf32>
    %157 = arith.addf %155, %156 : vector<1x128xf32>
    %158 = arith.mulf %153, %153 : vector<1x128xf32>
    %159 = arith.mulf %157, %157 : vector<1x128xf32>
    %160 = arith.addf %158, %159 : vector<1x128xf32>
    %161 = arith.mulf %135, %160 : vector<1x128xf32>
    %162 = arith.addf %96, %161 : vector<1x128xf32>
    %163 = arith.mulf %34, %137 : vector<1x128xf32>
    %164 = arith.mulf %37, %141 : vector<1x128xf32>
    %165 = arith.subf %163, %164 : vector<1x128xf32>
    %166 = arith.mulf %34, %141 : vector<1x128xf32>
    %167 = arith.mulf %37, %137 : vector<1x128xf32>
    %168 = arith.addf %166, %167 : vector<1x128xf32>
    %169 = arith.mulf %44, %139 : vector<1x128xf32>
    %170 = arith.addf %165, %169 : vector<1x128xf32>
    %171 = arith.mulf %47, %143 : vector<1x128xf32>
    %172 = arith.subf %170, %171 : vector<1x128xf32>
    %173 = arith.mulf %44, %143 : vector<1x128xf32>
    %174 = arith.addf %168, %173 : vector<1x128xf32>
    %175 = arith.mulf %47, %139 : vector<1x128xf32>
    %176 = arith.addf %174, %175 : vector<1x128xf32>
    %177 = arith.mulf %172, %172 : vector<1x128xf32>
    %178 = arith.mulf %176, %176 : vector<1x128xf32>
    %179 = arith.addf %177, %178 : vector<1x128xf32>
    %180 = arith.mulf %135, %179 : vector<1x128xf32>
    %181 = arith.addf %114, %180 : vector<1x128xf32>
    %182 = arith.mulf %54, %137 : vector<1x128xf32>
    %183 = arith.mulf %57, %141 : vector<1x128xf32>
    %184 = arith.subf %182, %183 : vector<1x128xf32>
    %185 = arith.mulf %54, %141 : vector<1x128xf32>
    %186 = arith.mulf %57, %137 : vector<1x128xf32>
    %187 = arith.addf %185, %186 : vector<1x128xf32>
    %188 = arith.mulf %64, %139 : vector<1x128xf32>
    %189 = arith.addf %184, %188 : vector<1x128xf32>
    %190 = arith.mulf %67, %143 : vector<1x128xf32>
    %191 = arith.subf %189, %190 : vector<1x128xf32>
    %192 = arith.mulf %64, %143 : vector<1x128xf32>
    %193 = arith.addf %187, %192 : vector<1x128xf32>
    %194 = arith.mulf %67, %139 : vector<1x128xf32>
    %195 = arith.addf %193, %194 : vector<1x128xf32>
    %196 = arith.mulf %191, %191 : vector<1x128xf32>
    %197 = arith.mulf %195, %195 : vector<1x128xf32>
    %198 = arith.addf %196, %197 : vector<1x128xf32>
    %199 = arith.mulf %135, %198 : vector<1x128xf32>
    %200 = arith.addf %132, %199 : vector<1x128xf32>
    %c2_66 = arith.constant 2 : index
    %c0_67 = arith.constant 0 : index
    %c0_68 = arith.constant 0 : index
    %201 = vector.load %arg1[%c2_66, %c0_67, %c0_68] : memref<3x1x128xf32, #tpu.memory_space<vmem>>, vector<1x1x128xf32>
    %202 = vector.shape_cast %201 : vector<1x1x128xf32> to vector<1x128xf32>
    %203 = arith.mulf %202, %202 : vector<1x128xf32>
    %c4_69 = arith.constant 4 : index
    %c0_70 = arith.constant 0 : index
    %c0_71 = arith.constant 0 : index
    %204 = vector.load %arg3[%c4_69, %c0_70, %c0_71] : memref<12x1x128xf32, #tpu.memory_space<vmem>>, vector<1x1x128xf32>
    %205 = vector.shape_cast %204 : vector<1x1x128xf32> to vector<1x128xf32>
    %c10_72 = arith.constant 10 : index
    %c0_73 = arith.constant 0 : index
    %c0_74 = arith.constant 0 : index
    %206 = vector.load %arg3[%c10_72, %c0_73, %c0_74] : memref<12x1x128xf32, #tpu.memory_space<vmem>>, vector<1x1x128xf32>
    %207 = vector.shape_cast %206 : vector<1x1x128xf32> to vector<1x128xf32>
    %c5_75 = arith.constant 5 : index
    %c0_76 = arith.constant 0 : index
    %c0_77 = arith.constant 0 : index
    %208 = vector.load %arg3[%c5_75, %c0_76, %c0_77] : memref<12x1x128xf32, #tpu.memory_space<vmem>>, vector<1x1x128xf32>
    %209 = vector.shape_cast %208 : vector<1x1x128xf32> to vector<1x128xf32>
    %c11_78 = arith.constant 11 : index
    %c0_79 = arith.constant 0 : index
    %c0_80 = arith.constant 0 : index
    %210 = vector.load %arg3[%c11_78, %c0_79, %c0_80] : memref<12x1x128xf32, #tpu.memory_space<vmem>>, vector<1x1x128xf32>
    %211 = vector.shape_cast %210 : vector<1x1x128xf32> to vector<1x128xf32>
    %212 = arith.mulf %14, %205 : vector<1x128xf32>
    %213 = arith.mulf %17, %209 : vector<1x128xf32>
    %214 = arith.subf %212, %213 : vector<1x128xf32>
    %215 = arith.mulf %14, %209 : vector<1x128xf32>
    %216 = arith.mulf %17, %205 : vector<1x128xf32>
    %217 = arith.addf %215, %216 : vector<1x128xf32>
    %218 = arith.mulf %24, %207 : vector<1x128xf32>
    %219 = arith.addf %214, %218 : vector<1x128xf32>
    %220 = arith.mulf %27, %211 : vector<1x128xf32>
    %221 = arith.subf %219, %220 : vector<1x128xf32>
    %222 = arith.mulf %24, %211 : vector<1x128xf32>
    %223 = arith.addf %217, %222 : vector<1x128xf32>
    %224 = arith.mulf %27, %207 : vector<1x128xf32>
    %225 = arith.addf %223, %224 : vector<1x128xf32>
    %226 = arith.mulf %221, %221 : vector<1x128xf32>
    %227 = arith.mulf %225, %225 : vector<1x128xf32>
    %228 = arith.addf %226, %227 : vector<1x128xf32>
    %229 = arith.mulf %203, %228 : vector<1x128xf32>
    %230 = arith.addf %162, %229 : vector<1x128xf32>
    %231 = arith.mulf %34, %205 : vector<1x128xf32>
    %232 = arith.mulf %37, %209 : vector<1x128xf32>
    %233 = arith.subf %231, %232 : vector<1x128xf32>
    %234 = arith.mulf %34, %209 : vector<1x128xf32>
    %235 = arith.mulf %37, %205 : vector<1x128xf32>
    %236 = arith.addf %234, %235 : vector<1x128xf32>
    %237 = arith.mulf %44, %207 : vector<1x128xf32>
    %238 = arith.addf %233, %237 : vector<1x128xf32>
    %239 = arith.mulf %47, %211 : vector<1x128xf32>
    %240 = arith.subf %238, %239 : vector<1x128xf32>
    %241 = arith.mulf %44, %211 : vector<1x128xf32>
    %242 = arith.addf %236, %241 : vector<1x128xf32>
    %243 = arith.mulf %47, %207 : vector<1x128xf32>
    %244 = arith.addf %242, %243 : vector<1x128xf32>
    %245 = arith.mulf %240, %240 : vector<1x128xf32>
    %246 = arith.mulf %244, %244 : vector<1x128xf32>
    %247 = arith.addf %245, %246 : vector<1x128xf32>
    %248 = arith.mulf %203, %247 : vector<1x128xf32>
    %249 = arith.addf %181, %248 : vector<1x128xf32>
    %250 = arith.mulf %54, %205 : vector<1x128xf32>
    %251 = arith.mulf %57, %209 : vector<1x128xf32>
    %252 = arith.subf %250, %251 : vector<1x128xf32>
    %253 = arith.mulf %54, %209 : vector<1x128xf32>
    %254 = arith.mulf %57, %205 : vector<1x128xf32>
    %255 = arith.addf %253, %254 : vector<1x128xf32>
    %256 = arith.mulf %64, %207 : vector<1x128xf32>
    %257 = arith.addf %252, %256 : vector<1x128xf32>
    %258 = arith.mulf %67, %211 : vector<1x128xf32>
    %259 = arith.subf %257, %258 : vector<1x128xf32>
    %260 = arith.mulf %64, %211 : vector<1x128xf32>
    %261 = arith.addf %255, %260 : vector<1x128xf32>
    %262 = arith.mulf %67, %207 : vector<1x128xf32>
    %263 = arith.addf %261, %262 : vector<1x128xf32>
    %264 = arith.mulf %259, %259 : vector<1x128xf32>
    %265 = arith.mulf %263, %263 : vector<1x128xf32>
    %266 = arith.addf %264, %265 : vector<1x128xf32>
    %267 = arith.mulf %203, %266 : vector<1x128xf32>
    %268 = arith.addf %200, %267 : vector<1x128xf32>
    %cst = arith.constant 1.000000e+00 : f32
    %269 = vector.broadcast %cst : f32 to vector<1x128xf32>
    %270 = arith.addf %230, %269 : vector<1x128xf32>
    %271 = arith.subf %270, %96 : vector<1x128xf32>
    %272 = tpu.reciprocal %271 {approx = true} : vector<1x128xf32> -> vector<1x128xf32>
    %273 = arith.mulf %271, %272 : vector<1x128xf32>
    %cst_81 = arith.constant 2.000000e+00 : f32
    %274 = vector.broadcast %cst_81 : f32 to vector<1x128xf32>
    %275 = arith.subf %274, %273 : vector<1x128xf32>
    %276 = arith.mulf %272, %275 : vector<1x128xf32>
    %277 = arith.mulf %96, %276 : vector<1x128xf32>
    %cst_82 = arith.constant 1.000000e+00 : f32
    %278 = vector.broadcast %cst_82 : f32 to vector<1x128xf32>
    %279 = arith.addf %278, %277 : vector<1x128xf32>
    %280 = tpu.reciprocal %270 {approx = true} : vector<1x128xf32> -> vector<1x128xf32>
    %281 = arith.mulf %270, %280 : vector<1x128xf32>
    %cst_83 = arith.constant 2.000000e+00 : f32
    %282 = vector.broadcast %cst_83 : f32 to vector<1x128xf32>
    %283 = arith.subf %282, %281 : vector<1x128xf32>
    %284 = arith.mulf %280, %283 : vector<1x128xf32>
    %cst_84 = arith.constant 5.000000e-01 : f32
    %285 = vector.broadcast %cst_84 : f32 to vector<1x128xf32>
    %286 = arith.mulf %285, %279 : vector<1x128xf32>
    %287 = arith.mulf %286, %96 : vector<1x128xf32>
    %288 = arith.mulf %287, %284 : vector<1x128xf32>
    %289 = arith.mulf %288, %284 : vector<1x128xf32>
    %cst_85 = arith.constant 1.000000e+00 : f32
    %290 = vector.broadcast %cst_85 : f32 to vector<1x128xf32>
    %291 = arith.addf %249, %290 : vector<1x128xf32>
    %292 = arith.subf %291, %180 : vector<1x128xf32>
    %293 = tpu.reciprocal %292 {approx = true} : vector<1x128xf32> -> vector<1x128xf32>
    %294 = arith.mulf %292, %293 : vector<1x128xf32>
    %cst_86 = arith.constant 2.000000e+00 : f32
    %295 = vector.broadcast %cst_86 : f32 to vector<1x128xf32>
    %296 = arith.subf %295, %294 : vector<1x128xf32>
    %297 = arith.mulf %293, %296 : vector<1x128xf32>
    %298 = arith.mulf %180, %297 : vector<1x128xf32>
    %cst_87 = arith.constant 1.000000e+00 : f32
    %299 = vector.broadcast %cst_87 : f32 to vector<1x128xf32>
    %300 = arith.addf %299, %298 : vector<1x128xf32>
    %301 = tpu.reciprocal %291 {approx = true} : vector<1x128xf32> -> vector<1x128xf32>
    %302 = arith.mulf %291, %301 : vector<1x128xf32>
    %cst_88 = arith.constant 2.000000e+00 : f32
    %303 = vector.broadcast %cst_88 : f32 to vector<1x128xf32>
    %304 = arith.subf %303, %302 : vector<1x128xf32>
    %305 = arith.mulf %301, %304 : vector<1x128xf32>
    %cst_89 = arith.constant 5.000000e-01 : f32
    %306 = vector.broadcast %cst_89 : f32 to vector<1x128xf32>
    %307 = arith.mulf %306, %300 : vector<1x128xf32>
    %308 = arith.mulf %307, %180 : vector<1x128xf32>
    %309 = arith.mulf %308, %305 : vector<1x128xf32>
    %310 = arith.mulf %309, %305 : vector<1x128xf32>
    %cst_90 = arith.constant 1.000000e+00 : f32
    %311 = vector.broadcast %cst_90 : f32 to vector<1x128xf32>
    %312 = arith.addf %268, %311 : vector<1x128xf32>
    %313 = arith.subf %312, %267 : vector<1x128xf32>
    %314 = tpu.reciprocal %313 {approx = true} : vector<1x128xf32> -> vector<1x128xf32>
    %315 = arith.mulf %313, %314 : vector<1x128xf32>
    %cst_91 = arith.constant 2.000000e+00 : f32
    %316 = vector.broadcast %cst_91 : f32 to vector<1x128xf32>
    %317 = arith.subf %316, %315 : vector<1x128xf32>
    %318 = arith.mulf %314, %317 : vector<1x128xf32>
    %319 = arith.mulf %267, %318 : vector<1x128xf32>
    %cst_92 = arith.constant 1.000000e+00 : f32
    %320 = vector.broadcast %cst_92 : f32 to vector<1x128xf32>
    %321 = arith.addf %320, %319 : vector<1x128xf32>
    %322 = tpu.reciprocal %312 {approx = true} : vector<1x128xf32> -> vector<1x128xf32>
    %323 = arith.mulf %312, %322 : vector<1x128xf32>
    %cst_93 = arith.constant 2.000000e+00 : f32
    %324 = vector.broadcast %cst_93 : f32 to vector<1x128xf32>
    %325 = arith.subf %324, %323 : vector<1x128xf32>
    %326 = arith.mulf %322, %325 : vector<1x128xf32>
    %cst_94 = arith.constant 5.000000e-01 : f32
    %327 = vector.broadcast %cst_94 : f32 to vector<1x128xf32>
    %328 = arith.mulf %327, %321 : vector<1x128xf32>
    %329 = arith.mulf %328, %267 : vector<1x128xf32>
    %330 = arith.mulf %329, %326 : vector<1x128xf32>
    %331 = arith.mulf %330, %326 : vector<1x128xf32>
    %332 = arith.mulf %279, %289 : vector<1x128xf32>
    %333 = arith.mulf %332, %95 : vector<1x128xf32>
    %334 = arith.mulf %289, %95 : vector<1x128xf32>
    %335 = arith.mulf %310, %113 : vector<1x128xf32>
    %336 = arith.addf %334, %335 : vector<1x128xf32>
    %337 = arith.mulf %331, %131 : vector<1x128xf32>
    %338 = arith.addf %336, %337 : vector<1x128xf32>
    %cst_95 = arith.constant 0.000000e+00 : f32
    %339 = vector.broadcast %cst_95 : f32 to vector<1x128xf32>
    %340 = arith.cmpf ogt, %338, %339 : vector<1x128xf32>
    %cst_96 = arith.constant 1.000000e+00 : f32
    %341 = vector.broadcast %cst_96 : f32 to vector<1x128xf32>
    %342 = arith.select %340, %338, %341 : vector<1x128xi1>, vector<1x128xf32>
    %cst_97 = arith.constant 5.000000e-01 : f32
    %343 = vector.broadcast %cst_97 : f32 to vector<1x128xf32>
    %344 = arith.mulf %343, %333 : vector<1x128xf32>
    %345 = math.sqrt %344 : vector<1x128xf32>
    %346 = tpu.reciprocal %342 {approx = true} : vector<1x128xf32> -> vector<1x128xf32>
    %347 = arith.mulf %342, %346 : vector<1x128xf32>
    %cst_98 = arith.constant 2.000000e+00 : f32
    %348 = vector.broadcast %cst_98 : f32 to vector<1x128xf32>
    %349 = arith.subf %348, %347 : vector<1x128xf32>
    %350 = arith.mulf %346, %349 : vector<1x128xf32>
    %351 = arith.mulf %345, %350 : vector<1x128xf32>
    %cst_99 = arith.constant 1.000000e+00 : f32
    %352 = vector.broadcast %cst_99 : f32 to vector<1x128xf32>
    %353 = arith.minimumf %352, %351 : vector<1x128xf32>
    %354 = arith.mulf %353, %353 : vector<1x128xf32>
    %355 = arith.mulf %300, %310 : vector<1x128xf32>
    %356 = arith.mulf %355, %179 : vector<1x128xf32>
    %357 = arith.mulf %289, %160 : vector<1x128xf32>
    %358 = arith.mulf %310, %179 : vector<1x128xf32>
    %359 = arith.addf %357, %358 : vector<1x128xf32>
    %360 = arith.mulf %331, %198 : vector<1x128xf32>
    %361 = arith.addf %359, %360 : vector<1x128xf32>
    %cst_100 = arith.constant 0.000000e+00 : f32
    %362 = vector.broadcast %cst_100 : f32 to vector<1x128xf32>
    %363 = arith.cmpf ogt, %361, %362 : vector<1x128xf32>
    %cst_101 = arith.constant 1.000000e+00 : f32
    %364 = vector.broadcast %cst_101 : f32 to vector<1x128xf32>
    %365 = arith.select %363, %361, %364 : vector<1x128xi1>, vector<1x128xf32>
    %cst_102 = arith.constant 5.000000e-01 : f32
    %366 = vector.broadcast %cst_102 : f32 to vector<1x128xf32>
    %367 = arith.mulf %366, %356 : vector<1x128xf32>
    %368 = math.sqrt %367 : vector<1x128xf32>
    %369 = tpu.reciprocal %365 {approx = true} : vector<1x128xf32> -> vector<1x128xf32>
    %370 = arith.mulf %365, %369 : vector<1x128xf32>
    %cst_103 = arith.constant 2.000000e+00 : f32
    %371 = vector.broadcast %cst_103 : f32 to vector<1x128xf32>
    %372 = arith.subf %371, %370 : vector<1x128xf32>
    %373 = arith.mulf %369, %372 : vector<1x128xf32>
    %374 = arith.mulf %368, %373 : vector<1x128xf32>
    %cst_104 = arith.constant 1.000000e+00 : f32
    %375 = vector.broadcast %cst_104 : f32 to vector<1x128xf32>
    %376 = arith.minimumf %375, %374 : vector<1x128xf32>
    %377 = arith.mulf %376, %376 : vector<1x128xf32>
    %378 = arith.mulf %321, %331 : vector<1x128xf32>
    %379 = arith.mulf %378, %266 : vector<1x128xf32>
    %380 = arith.mulf %289, %228 : vector<1x128xf32>
    %381 = arith.mulf %310, %247 : vector<1x128xf32>
    %382 = arith.addf %380, %381 : vector<1x128xf32>
    %383 = arith.mulf %331, %266 : vector<1x128xf32>
    %384 = arith.addf %382, %383 : vector<1x128xf32>
    %cst_105 = arith.constant 0.000000e+00 : f32
    %385 = vector.broadcast %cst_105 : f32 to vector<1x128xf32>
    %386 = arith.cmpf ogt, %384, %385 : vector<1x128xf32>
    %cst_106 = arith.constant 1.000000e+00 : f32
    %387 = vector.broadcast %cst_106 : f32 to vector<1x128xf32>
    %388 = arith.select %386, %384, %387 : vector<1x128xi1>, vector<1x128xf32>
    %cst_107 = arith.constant 5.000000e-01 : f32
    %389 = vector.broadcast %cst_107 : f32 to vector<1x128xf32>
    %390 = arith.mulf %389, %379 : vector<1x128xf32>
    %391 = math.sqrt %390 : vector<1x128xf32>
    %392 = tpu.reciprocal %388 {approx = true} : vector<1x128xf32> -> vector<1x128xf32>
    %393 = arith.mulf %388, %392 : vector<1x128xf32>
    %cst_108 = arith.constant 2.000000e+00 : f32
    %394 = vector.broadcast %cst_108 : f32 to vector<1x128xf32>
    %395 = arith.subf %394, %393 : vector<1x128xf32>
    %396 = arith.mulf %392, %395 : vector<1x128xf32>
    %397 = arith.mulf %391, %396 : vector<1x128xf32>
    %cst_109 = arith.constant 1.000000e+00 : f32
    %398 = vector.broadcast %cst_109 : f32 to vector<1x128xf32>
    %399 = arith.minimumf %398, %397 : vector<1x128xf32>
    %400 = arith.mulf %399, %399 : vector<1x128xf32>
    %401 = arith.mulf %354, %95 : vector<1x128xf32>
    %402 = arith.mulf %377, %160 : vector<1x128xf32>
    %403 = arith.addf %401, %402 : vector<1x128xf32>
    %404 = arith.mulf %400, %228 : vector<1x128xf32>
    %405 = arith.addf %403, %404 : vector<1x128xf32>
    %406 = math.sqrt %279 : vector<1x128xf32>
    %407 = arith.mulf %406, %353 : vector<1x128xf32>
    %cst_110 = arith.constant 0.707106769 : f32
    %408 = vector.broadcast %cst_110 : f32 to vector<1x128xf32>
    %409 = arith.mulf %407, %408 : vector<1x128xf32>
    %cst_111 = arith.constant 1.000000e+00 : f32
    %410 = vector.broadcast %cst_111 : f32 to vector<1x128xf32>
    %411 = arith.addf %405, %410 : vector<1x128xf32>
    %412 = tpu.reciprocal %411 {approx = true} : vector<1x128xf32> -> vector<1x128xf32>
    %413 = arith.mulf %411, %412 : vector<1x128xf32>
    %cst_112 = arith.constant 2.000000e+00 : f32
    %414 = vector.broadcast %cst_112 : f32 to vector<1x128xf32>
    %415 = arith.subf %414, %413 : vector<1x128xf32>
    %416 = arith.mulf %412, %415 : vector<1x128xf32>
    %417 = arith.mulf %409, %416 : vector<1x128xf32>
    %418 = arith.mulf %417, %88 : vector<1x128xf32>
    %419 = arith.mulf %417, %92 : vector<1x128xf32>
    %420 = arith.mulf %354, %113 : vector<1x128xf32>
    %421 = arith.mulf %377, %179 : vector<1x128xf32>
    %422 = arith.addf %420, %421 : vector<1x128xf32>
    %423 = arith.mulf %400, %247 : vector<1x128xf32>
    %424 = arith.addf %422, %423 : vector<1x128xf32>
    %425 = math.sqrt %300 : vector<1x128xf32>
    %426 = arith.mulf %425, %376 : vector<1x128xf32>
    %cst_113 = arith.constant 0.707106769 : f32
    %427 = vector.broadcast %cst_113 : f32 to vector<1x128xf32>
    %428 = arith.mulf %426, %427 : vector<1x128xf32>
    %cst_114 = arith.constant 1.000000e+00 : f32
    %429 = vector.broadcast %cst_114 : f32 to vector<1x128xf32>
    %430 = arith.addf %424, %429 : vector<1x128xf32>
    %431 = tpu.reciprocal %430 {approx = true} : vector<1x128xf32> -> vector<1x128xf32>
    %432 = arith.mulf %430, %431 : vector<1x128xf32>
    %cst_115 = arith.constant 2.000000e+00 : f32
    %433 = vector.broadcast %cst_115 : f32 to vector<1x128xf32>
    %434 = arith.subf %433, %432 : vector<1x128xf32>
    %435 = arith.mulf %431, %434 : vector<1x128xf32>
    %436 = arith.mulf %428, %435 : vector<1x128xf32>
    %437 = arith.mulf %436, %172 : vector<1x128xf32>
    %438 = arith.mulf %436, %176 : vector<1x128xf32>
    %439 = arith.mulf %354, %131 : vector<1x128xf32>
    %440 = arith.mulf %377, %198 : vector<1x128xf32>
    %441 = arith.addf %439, %440 : vector<1x128xf32>
    %442 = arith.mulf %400, %266 : vector<1x128xf32>
    %443 = arith.addf %441, %442 : vector<1x128xf32>
    %444 = math.sqrt %321 : vector<1x128xf32>
    %445 = arith.mulf %444, %399 : vector<1x128xf32>
    %cst_116 = arith.constant 0.707106769 : f32
    %446 = vector.broadcast %cst_116 : f32 to vector<1x128xf32>
    %447 = arith.mulf %445, %446 : vector<1x128xf32>
    %cst_117 = arith.constant 1.000000e+00 : f32
    %448 = vector.broadcast %cst_117 : f32 to vector<1x128xf32>
    %449 = arith.addf %443, %448 : vector<1x128xf32>
    %450 = tpu.reciprocal %449 {approx = true} : vector<1x128xf32> -> vector<1x128xf32>
    %451 = arith.mulf %449, %450 : vector<1x128xf32>
    %cst_118 = arith.constant 2.000000e+00 : f32
    %452 = vector.broadcast %cst_118 : f32 to vector<1x128xf32>
    %453 = arith.subf %452, %451 : vector<1x128xf32>
    %454 = arith.mulf %450, %453 : vector<1x128xf32>
    %455 = arith.mulf %447, %454 : vector<1x128xf32>
    %456 = arith.mulf %455, %259 : vector<1x128xf32>
    %457 = arith.mulf %455, %263 : vector<1x128xf32>
    %c0_119 = arith.constant 0 : index
    %c0_120 = arith.constant 0 : index
    %c0_121 = arith.constant 0 : index
    %458 = vector.load %arg5[%c0_119, %c0_120, %c0_121] : memref<12x1x128xf32, #tpu.memory_space<vmem>>, vector<1x1x128xf32>
    %459 = vector.shape_cast %458 : vector<1x1x128xf32> to vector<1x128xf32>
    %460 = vector.shape_cast %353 : vector<1x128xf32> to vector<1x1x128xf32>
    tpu.vector_store %arg5[%c0_119, %c0_120, %c0_121], %460 {strides = array<i32>} : memref<12x1x128xf32, #tpu.memory_space<vmem>>, vector<1x1x128xf32>,
    %c1_122 = arith.constant 1 : index
    %c0_123 = arith.constant 0 : index
    %c0_124 = arith.constant 0 : index
    %461 = vector.load %arg5[%c1_122, %c0_123, %c0_124] : memref<12x1x128xf32, #tpu.memory_space<vmem>>, vector<1x1x128xf32>
    %462 = vector.shape_cast %461 : vector<1x1x128xf32> to vector<1x128xf32>
    %463 = vector.shape_cast %376 : vector<1x128xf32> to vector<1x1x128xf32>
    tpu.vector_store %arg5[%c1_122, %c0_123, %c0_124], %463 {strides = array<i32>} : memref<12x1x128xf32, #tpu.memory_space<vmem>>, vector<1x1x128xf32>,
    %c2_125 = arith.constant 2 : index
    %c0_126 = arith.constant 0 : index
    %c0_127 = arith.constant 0 : index
    %464 = vector.load %arg5[%c2_125, %c0_126, %c0_127] : memref<12x1x128xf32, #tpu.memory_space<vmem>>, vector<1x1x128xf32>
    %465 = vector.shape_cast %464 : vector<1x1x128xf32> to vector<1x128xf32>
    %466 = vector.shape_cast %399 : vector<1x128xf32> to vector<1x1x128xf32>
    tpu.vector_store %arg5[%c2_125, %c0_126, %c0_127], %466 {strides = array<i32>} : memref<12x1x128xf32, #tpu.memory_space<vmem>>, vector<1x1x128xf32>,
    %c3_128 = arith.constant 3 : index
    %c0_129 = arith.constant 0 : index
    %c0_130 = arith.constant 0 : index
    %467 = vector.load %arg5[%c3_128, %c0_129, %c0_130] : memref<12x1x128xf32, #tpu.memory_space<vmem>>, vector<1x1x128xf32>
    %468 = vector.shape_cast %467 : vector<1x1x128xf32> to vector<1x128xf32>
    %469 = vector.shape_cast %277 : vector<1x128xf32> to vector<1x1x128xf32>
    tpu.vector_store %arg5[%c3_128, %c0_129, %c0_130], %469 {strides = array<i32>} : memref<12x1x128xf32, #tpu.memory_space<vmem>>, vector<1x1x128xf32>,
    %c4_131 = arith.constant 4 : index
    %c0_132 = arith.constant 0 : index
    %c0_133 = arith.constant 0 : index
    %470 = vector.load %arg5[%c4_131, %c0_132, %c0_133] : memref<12x1x128xf32, #tpu.memory_space<vmem>>, vector<1x1x128xf32>
    %471 = vector.shape_cast %470 : vector<1x1x128xf32> to vector<1x128xf32>
    %472 = vector.shape_cast %298 : vector<1x128xf32> to vector<1x1x128xf32>
    tpu.vector_store %arg5[%c4_131, %c0_132, %c0_133], %472 {strides = array<i32>} : memref<12x1x128xf32, #tpu.memory_space<vmem>>, vector<1x1x128xf32>,
    %c5_134 = arith.constant 5 : index
    %c0_135 = arith.constant 0 : index
    %c0_136 = arith.constant 0 : index
    %473 = vector.load %arg5[%c5_134, %c0_135, %c0_136] : memref<12x1x128xf32, #tpu.memory_space<vmem>>, vector<1x1x128xf32>
    %474 = vector.shape_cast %473 : vector<1x1x128xf32> to vector<1x128xf32>
    %475 = vector.shape_cast %319 : vector<1x128xf32> to vector<1x1x128xf32>
    tpu.vector_store %arg5[%c5_134, %c0_135, %c0_136], %475 {strides = array<i32>} : memref<12x1x128xf32, #tpu.memory_space<vmem>>, vector<1x1x128xf32>,
    %c6_137 = arith.constant 6 : index
    %c0_138 = arith.constant 0 : index
    %c0_139 = arith.constant 0 : index
    %476 = vector.load %arg5[%c6_137, %c0_138, %c0_139] : memref<12x1x128xf32, #tpu.memory_space<vmem>>, vector<1x1x128xf32>
    %477 = vector.shape_cast %476 : vector<1x1x128xf32> to vector<1x128xf32>
    %478 = vector.shape_cast %418 : vector<1x128xf32> to vector<1x1x128xf32>
    tpu.vector_store %arg5[%c6_137, %c0_138, %c0_139], %478 {strides = array<i32>} : memref<12x1x128xf32, #tpu.memory_space<vmem>>, vector<1x1x128xf32>,
    %c7_140 = arith.constant 7 : index
    %c0_141 = arith.constant 0 : index
    %c0_142 = arith.constant 0 : index
    %479 = vector.load %arg5[%c7_140, %c0_141, %c0_142] : memref<12x1x128xf32, #tpu.memory_space<vmem>>, vector<1x1x128xf32>
    %480 = vector.shape_cast %479 : vector<1x1x128xf32> to vector<1x128xf32>
    %481 = vector.shape_cast %437 : vector<1x128xf32> to vector<1x1x128xf32>
    tpu.vector_store %arg5[%c7_140, %c0_141, %c0_142], %481 {strides = array<i32>} : memref<12x1x128xf32, #tpu.memory_space<vmem>>, vector<1x1x128xf32>,
    %c8_143 = arith.constant 8 : index
    %c0_144 = arith.constant 0 : index
    %c0_145 = arith.constant 0 : index
    %482 = vector.load %arg5[%c8_143, %c0_144, %c0_145] : memref<12x1x128xf32, #tpu.memory_space<vmem>>, vector<1x1x128xf32>
    %483 = vector.shape_cast %482 : vector<1x1x128xf32> to vector<1x128xf32>
    %484 = vector.shape_cast %456 : vector<1x128xf32> to vector<1x1x128xf32>
    tpu.vector_store %arg5[%c8_143, %c0_144, %c0_145], %484 {strides = array<i32>} : memref<12x1x128xf32, #tpu.memory_space<vmem>>, vector<1x1x128xf32>,
    %c9_146 = arith.constant 9 : index
    %c0_147 = arith.constant 0 : index
    %c0_148 = arith.constant 0 : index
    %485 = vector.load %arg5[%c9_146, %c0_147, %c0_148] : memref<12x1x128xf32, #tpu.memory_space<vmem>>, vector<1x1x128xf32>
    %486 = vector.shape_cast %485 : vector<1x1x128xf32> to vector<1x128xf32>
    %487 = vector.shape_cast %419 : vector<1x128xf32> to vector<1x1x128xf32>
    tpu.vector_store %arg5[%c9_146, %c0_147, %c0_148], %487 {strides = array<i32>} : memref<12x1x128xf32, #tpu.memory_space<vmem>>, vector<1x1x128xf32>,
    %c10_149 = arith.constant 10 : index
    %c0_150 = arith.constant 0 : index
    %c0_151 = arith.constant 0 : index
    %488 = vector.load %arg5[%c10_149, %c0_150, %c0_151] : memref<12x1x128xf32, #tpu.memory_space<vmem>>, vector<1x1x128xf32>
    %489 = vector.shape_cast %488 : vector<1x1x128xf32> to vector<1x128xf32>
    %490 = vector.shape_cast %438 : vector<1x128xf32> to vector<1x1x128xf32>
    tpu.vector_store %arg5[%c10_149, %c0_150, %c0_151], %490 {strides = array<i32>} : memref<12x1x128xf32, #tpu.memory_space<vmem>>, vector<1x1x128xf32>,
    %c11_152 = arith.constant 11 : index
    %c0_153 = arith.constant 0 : index
    %c0_154 = arith.constant 0 : index
    %491 = vector.load %arg5[%c11_152, %c0_153, %c0_154] : memref<12x1x128xf32, #tpu.memory_space<vmem>>, vector<1x1x128xf32>
    %492 = vector.shape_cast %491 : vector<1x1x128xf32> to vector<1x128xf32>
    %493 = vector.shape_cast %457 : vector<1x128xf32> to vector<1x1x128xf32>
    tpu.vector_store %arg5[%c11_152, %c0_153, %c0_154], %493 {strides = array<i32>} : memref<12x1x128xf32, #tpu.memory_space<vmem>>, vector<1x1x128xf32>,
    return
  }
  func.func @transform_0(%arg0: i32) -> (i32, i32, i32) {
    %c0_i32 = arith.constant 0 : i32
    %c0_i32_0 = arith.constant 0 : i32
    %c0_i32_1 = arith.constant 0 : i32
    return %c0_i32, %arg0, %c0_i32_0 : i32, i32, i32
  }
  func.func @transform_1(%arg0: i32) -> (i32, i32, i32) {
    %c0_i32 = arith.constant 0 : i32
    %c0_i32_0 = arith.constant 0 : i32
    %c0_i32_1 = arith.constant 0 : i32
    return %c0_i32, %arg0, %c0_i32_0 : i32, i32, i32
  }
  func.func @transform_2(%arg0: i32) -> (i32, i32, i32) {
    %c0_i32 = arith.constant 0 : i32
    %c0_i32_0 = arith.constant 0 : i32
    %c0_i32_1 = arith.constant 0 : i32
    return %c0_i32, %arg0, %c0_i32_0 : i32, i32, i32
  }
  func.func @transform_3(%arg0: i32) -> (i32, i32, i32) {
    %c0_i32 = arith.constant 0 : i32
    %c0_i32_0 = arith.constant 0 : i32
    %c0_i32_1 = arith.constant 0 : i32
    return %c0_i32, %arg0, %c0_i32_0 : i32, i32, i32
  }
  func.func @transform_4(%arg0: i32) -> (i32, i32, i32) {
    %c0_i32 = arith.constant 0 : i32
    %c0_i32_0 = arith.constant 0 : i32
    %c0_i32_1 = arith.constant 0 : i32
    return %c0_i32, %arg0, %c0_i32_0 : i32, i32, i32
  }
}

</mosaic_0001>

<bundles_post_ra>
// kernel: tpu_custom_call.1
= control target key start
LH: loop header
LB: loop body
LE: loop exit
PB: predicated region body
PF: predicated region fallthrough
CT: control target
= control target key end

     0   :  { %9 = vsyncpa [#allocation3], 0  ;;  %s1080_s0 = inlined_call_operand.hbm [shape: f32[3,1,128], index: 0, kind: input, shape index: {}]   ;;  %s1081_s1 = inlined_call_operand.hbm [shape: f32[4,1,128], index: 1, kind: input, shape index: {}]   ;;  %s1082_s2 = inlined_call_operand.hbm [shape: f32[12,1,128], index: 2, kind: input, shape index: {}]   ;;  %s1083_s3 = inlined_call_operand.hbm [shape: f32[12,1,128], index: 3, kind: input, shape index: {}]   ;;  %s1084_s4 = inlined_call_operand.hbm [shape: f32[12,1,128], index: 4, kind: output, shape index: {}]  }
   0x1   :  { %10 = vsyncpa [#allocation6], 0 }
   0x2   :  { %11 = vsyncpa [#allocation9], 0 }
   0x3   :  { %12 = vsyncpa [#allocation4], 0  ;;  %s727_s15 = smov [#allocation5]   ;;  %s728_s17 = smov [#allocation2]  }
   0x4   :  { %s30_s16 = sshll.u32 %s727_s15, 4  ;;  %s18_s18 = sshll.u32 %s728_s17, 4  ;;  %s31_s16 = int_to_ptr.vmem [resolvable:$true] %s30_s16  ;;  %s759_s18 = int_to_ptr.vmem [resolvable:$true] %s18_s18 }
   0x5   :  { %s609_s21 = scalar_lea.hbm %s1081_s1, 64 }
   0x6   :  { %p610_p0 = scmp.ne.s32.totalorder %s1081_s1, %s609_s21  ;;  %p613_p1 = scmp.lt.u32.totalorder %s609_s21, %s1081_s1 }
   0x8   :  { %p615_p2 = pnand %p613_p1, %p610_p0 }
   0xa   :  { %618 = shalt.err (!%p615_p2)
}
   0xb   :  { %s619_s26 = scalar_lea.vmem %s31_s16, 64  ;;  %p624_p4 = scmp.lt.s32.totalorder %s31_s16, %s31_s16 }
   0xc   :  { %p620_p3 = scmp.ne.s32.totalorder %s31_s16, %s619_s26  ;;  %p625_p5 = scmp.lt.s32.totalorder %s619_s26, %s619_s26 }
   0xe   :  { %p626_p6 = por %p625_p5, %p624_p4 }
  0x10   :  { %p627_p7 = pnand %p626_p6, %p620_p3 }
  0x12   :  { %630 = shalt.err (!%p627_p7)
}
  0x13   :  { %s729_s27 = smov 16   ;;  %s730_s28 = smov 1  }
  0x14   :  { %36 = dma.hbm_to_vmem [thread:$0]  %s1081_s1, 64, %s31_s16, [#allocation6], %s729_s27, %s729_s27, %s730_s28  }
  0x15   :  { %s631_s7 = scalar_lea.hbm %s1080_s0, 48 }
  0x16   :  { %p632_p8 = scmp.ne.s32.totalorder %s1080_s0, %s631_s7  ;;  %p635_p9 = scmp.lt.u32.totalorder %s631_s7, %s1080_s0 }
  0x18   :  { %p637_p10 = pnand %p635_p9, %p632_p8 }
  0x1a   :  { %640 = shalt.err (!%p637_p10)
}
  0x1b   :  { %s641_s12 = scalar_lea.vmem %s759_s18, 48  ;;  %s645_s1 = scalar_lea.vmem %s759_s18, 64 }
  0x1c   :  { %p642_p11 = scmp.ne.s32.totalorder %s759_s18, %s641_s12  ;;  %p646_p12 = scmp.lt.s32.totalorder %s759_s18, %s759_s18 }
  0x1d   :  { %p647_p13 = scmp.lt.s32.totalorder %s645_s1, %s641_s12 }
  0x1f   :  { %p648_p0 = por %p647_p13, %p646_p12 }
  0x21   :  { %p649_p1 = pnand %p648_p0, %p642_p11 }
  0x23   :  { %652 = shalt.err (!%p649_p1)
}
  0x24   :  { %24 = dma.hbm_to_vmem [thread:$0]  %s1080_s0, 48, %s759_s18, [#allocation3], %s729_s27, %s729_s27, %s730_s28  }
  0x25   :  { %s731_s15 = smov [#allocation7]   ;;  %s732_s17 = smov [#allocation8]  }
  0x26   :  { %s42_s16 = sshll.u32 %s731_s15, 4  ;;  %s54_s19 = sshll.u32 %s732_s17, 4  ;;  %s43_s16 = int_to_ptr.vmem [resolvable:$true] %s42_s16  ;;  %s797_s19 = int_to_ptr.vmem [resolvable:$true] %s54_s19 }
  0x27   :  { %s653_s22 = scalar_lea.hbm %s1082_s2, 192 }
  0x28   :  { %p654_p2 = scmp.ne.s32.totalorder %s1082_s2, %s653_s22  ;;  %p657_p3 = scmp.lt.u32.totalorder %s653_s22, %s1082_s2 }
  0x2a   :  { %p659_p4 = pnand %p657_p3, %p654_p2 }
  0x2c   :  { %662 = shalt.err (!%p659_p4)
}
  0x2d   :  { %s663_s0 = scalar_lea.vmem %s43_s16, 192  ;;  %p668_p6 = scmp.lt.s32.totalorder %s43_s16, %s43_s16 }
  0x2e   :  { %p664_p5 = scmp.ne.s32.totalorder %s43_s16, %s663_s0  ;;  %p669_p7 = scmp.lt.s32.totalorder %s663_s0, %s663_s0 }
  0x30   :  { %p670_p8 = por %p669_p7, %p668_p6 }
  0x32   :  { %p671_p9 = pnand %p670_p8, %p664_p5 }
  0x34   :  { %674 = shalt.err (!%p671_p9)
}
  0x35   :  { %48 = dma.hbm_to_vmem [thread:$0]  %s1082_s2, 192, %s43_s16, [#allocation6], %s729_s27, %s729_s27, %s730_s28  }
  0x36   :  { %s675_s6 = scalar_lea.hbm %s1083_s3, 192 }
  0x37   :  { %p676_p10 = scmp.ne.s32.totalorder %s1083_s3, %s675_s6  ;;  %p679_p11 = scmp.lt.u32.totalorder %s675_s6, %s1083_s3 }
  0x39   :  { %p681_p12 = pnand %p679_p11, %p676_p10 }
  0x3b   :  { %684 = shalt.err (!%p681_p12)
}
  0x3c   :  { %s685_s11 = scalar_lea.vmem %s797_s19, 192  ;;  %p690_p0 = scmp.lt.s32.totalorder %s797_s19, %s797_s19 }
  0x3d   :  { %p686_p13 = scmp.ne.s32.totalorder %s797_s19, %s685_s11  ;;  %p691_p1 = scmp.lt.s32.totalorder %s685_s11, %s685_s11 }
  0x3f   :  { %p692_p2 = por %p691_p1, %p690_p0 }
  0x41   :  { %p693_p3 = pnand %p692_p2, %p686_p13 }
  0x43   :  { %696 = shalt.err (!%p693_p3)
}
  0x44   :  { %60 = dma.hbm_to_vmem [thread:$0]  %s1083_s3, 192, %s797_s19, [#allocation9], %s729_s27, %s729_s27, %s730_s28  }
  0x45   :  { %719 = dma.done.wait [#allocation3], 48  }
  0x46   :  { %720 = vsyncadd [#allocation3], 4294967248 }
  0x47   :  { %721 = dma.done.wait [#allocation6], 256  }
  0x48   :  { %722 = vsyncadd [#allocation6], 4294967040 }
  0x49   :  { %723 = dma.done.wait [#allocation9], 192  }
  0x4a   :  { %724 = vsyncadd [#allocation9], 4294967104  ;;  %v73_v0 = vld [vmem:[#allocation5] sm:$0x1]  ;;  %v75_v1 = vld [vmem:[#allocation5 + $0x2] sm:$0x1] }
  0x4b   :  { %v77_v2 = vld [vmem:[#allocation5 + $0x1] sm:$0x1]  ;;  %v79_v3 = vld [vmem:[#allocation5 + $0x3] sm:$0x1]  ;;  %v80_v4 = vld [vmem:[#allocation8] sm:$0x1] }
  0x4c   :  { %v82_v5 = vld [vmem:[#allocation8 + $0x1] sm:$0x1]  ;;  %v83_v6 = vmul.f32 %v80_v4, %v73_v0  ;;  %v86_v8 = vmul.f32 %v80_v4, %v77_v2  ;;  %v90_v10 = vld [vmem:[#allocation8 + $0x2] sm:$0x1]  ;;  %v92_v11 = vld [vmem:[#allocation8 + $0x3] sm:$0x1] }
  0x4d   :  { %v84_v7 = vmul.f32 %v82_v5, %v77_v2  ;;  %v87_v9 = vmul.f32 %v82_v5, %v73_v0  ;;  %v100_v12 = vld [vmem:[#allocation8 + $0x4] sm:$0x1]  ;;  %v93_v13 = vmul.f32 %v90_v10, %v75_v1  ;;  %v94_v14 = vmul.f32 %v92_v11, %v79_v3  ;;  %v102_v17 = vld [vmem:[#allocation8 + $0x5] sm:$0x1]  ;;  %v110_v18 = vld [vmem:[#allocation8 + $0x6] sm:$0x1] }
  0x4e   :  { %v96_v15 = vmul.f32 %v90_v10, %v79_v3  ;;  %v97_v16 = vmul.f32 %v92_v11, %v75_v1  ;;  %v112_v19 = vld [vmem:[#allocation8 + $0x7] sm:$0x1]  ;;  %v103_v21 = vmul.f32 %v100_v12, %v73_v0  ;;  %v104_v22 = vmul.f32 %v102_v17, %v77_v2  ;;  %v120_v23 = vld [vmem:[#allocation8 + $0x8] sm:$0x1]  ;;  %v122_v24 = vld [vmem:[#allocation8 + $0x9] sm:$0x1] }
  0x4f   :  { %v834_v20 = vsub.f32 %v83_v6, %v84_v7  ;;  %v836_v25 = vadd.f32 %v87_v9, %v86_v8  ;;  %v838_v26 = vsub.f32 %v93_v13, %v94_v14  ;;  %v106_v27 = vmul.f32 %v100_v12, %v77_v2  ;;  %v130_v29 = vld [vmem:[#allocation8 + $0xa] sm:$0x1]  ;;  %v132_v34 = vld [vmem:[#allocation8 + $0xb] sm:$0x1]  ;;  %v141_v39 = vld [vmem:[#allocation7] sm:$0x1] }
  0x50   :  { %v107_v28 = vmul.f32 %v102_v17, %v73_v0  ;;  %v840_v30 = vadd.f32 %v97_v16, %v96_v15  ;;  %v113_v31 = vmul.f32 %v110_v18, %v75_v1  ;;  %v114_v32 = vmul.f32 %v112_v19, %v79_v3  ;;  %v145_v44 = vld [vmem:[#allocation7 + $0x1] sm:$0x1]  ;;  %v143_v49 = vld [vmem:[#allocation7 + $0x6] sm:$0x1]  ;;  %v147_v50 = vld [vmem:[#allocation7 + $0x7] sm:$0x1] }
  0x51   :  { %v116_v33 = vmul.f32 %v110_v18, %v79_v3  ;;  %v842_v35 = vsub.f32 %v103_v21, %v104_v22  ;;  %v117_v36 = vmul.f32 %v112_v19, %v75_v1  ;;  %v123_v37 = vmul.f32 %v120_v23, %v73_v0  ;;  %s733_s3 = smov [#allocation10]  }
  0x52   :  { %v124_v38 = vmul.f32 %v122_v24, %v77_v2  ;;  %v844_v40 = vadd.f32 %v107_v28, %v106_v27  ;;  %v126_v41 = vmul.f32 %v120_v23, %v77_v2  ;;  %v127_v42 = vmul.f32 %v122_v24, %v73_v0  ;;  %s552_s1 = sshll.u32 %s733_s3, 4  ;;  %s553_s1 = int_to_ptr.vmem [resolvable:$true] %s552_s1 }
  0x53   :  { %v133_v43 = vmul.f32 %v130_v29, %v75_v1  ;;  %v846_v45 = vsub.f32 %v113_v31, %v114_v32  ;;  %v848_v46 = vadd.f32 %v117_v36, %v116_v33  ;;  %v134_v47 = vmul.f32 %v132_v34, %v79_v3  ;;  %v206_v31 = vld [vmem:[#allocation7 + $0x2] sm:$0x1]  ;;  %v139_v32 = vld [vmem:[#allocation2] sm:$0x1]  ;;  %s697_s13 = scalar_lea.vmem %s553_s1, 192  ;;  %p702_p5 = scmp.lt.s32.totalorder %s553_s1, %s553_s1 }
  0x54   :  { %v136_v48 = vmul.f32 %v130_v29, %v79_v3  ;;  %v850_v51 = vsub.f32 %v123_v37, %v124_v38  ;;  %v852_v52 = vadd.f32 %v127_v42, %v126_v41  ;;  %v137_v53 = vmul.f32 %v132_v34, %v75_v1  ;;  %v210_v38 = vld [vmem:[#allocation7 + $0x3] sm:$0x1]  ;;  %v208_v42 = vld [vmem:[#allocation7 + $0x8] sm:$0x1]  ;;  %p698_p4 = scmp.ne.s32.totalorder %s553_s1, %s697_s13  ;;  %p703_p6 = scmp.lt.s32.totalorder %s697_s13, %s697_s13 }
  0x55   :  { %v148_v54 = vmul.f32 %v141_v39, %v834_v20  ;;  %v855_v55 = vsub.f32 %v133_v43, %v134_v47  ;;  %v149_v56 = vmul.f32 %v145_v44, %v836_v25  ;;  %v151_v57 = vmul.f32 %v145_v44, %v834_v20 }
  0x56   :  { %v152_v58 = vmul.f32 %v141_v39, %v836_v25  ;;  %v860_v59 = vadd.f32 %v137_v53, %v136_v48  ;;  %v154_v60 = vmul.f32 %v143_v49, %v838_v26  ;;  %v156_v61 = vmul.f32 %v147_v50, %v840_v30  ;;  %v203_v48 = vld [vmem:[#allocation2 + $0x1] sm:$0x1]  ;;  %v212_v53 = vld [vmem:[#allocation7 + $0x9] sm:$0x1]  ;;  %p704_p7 = por %p703_p6, %p702_p5 }
  0x57   :  { %v158_v62 = vmul.f32 %v147_v50, %v838_v26  ;;  %v150_v63 = vsub.f32 %v148_v54, %v149_v56  ;;  %v160_v1 = vmul.f32 %v143_v49, %v840_v30  ;;  %v166_v2 = vmul.f32 %v141_v39, %v842_v35 }
  0x58   :  { %v153_v0 = vadd.f32 %v152_v58, %v151_v57  ;;  %v167_v3 = vmul.f32 %v145_v44, %v844_v40  ;;  %v169_v4 = vmul.f32 %v145_v44, %v842_v35  ;;  %v170_v5 = vmul.f32 %v141_v39, %v844_v40  ;;  %p705_p8 = pnand %p704_p7, %p698_p4 }
  0x59   :  { %v172_v6 = vmul.f32 %v143_v49, %v846_v45  ;;  %v155_v7 = vadd.f32 %v154_v60, %v150_v63  ;;  %v174_v9 = vmul.f32 %v147_v50, %v848_v46  ;;  %v176_v10 = vmul.f32 %v147_v50, %v846_v45 }
  0x5a   :  { %v159_v8 = vadd.f32 %v158_v62, %v153_v0  ;;  %v168_v11 = vsub.f32 %v166_v2, %v167_v3  ;;  %v171_v12 = vadd.f32 %v170_v5, %v169_v4  ;;  %v178_v13 = vmul.f32 %v143_v49, %v848_v46 }
  0x5b   :  { %v184_v14 = vmul.f32 %v141_v39, %v850_v51  ;;  %v875_v15 = vsub.f32 %v155_v7, %v156_v61  ;;  %v185_v17 = vmul.f32 %v145_v44, %v852_v52  ;;  %v187_v18 = vmul.f32 %v145_v44, %v850_v51 }
  0x5c   :  { %v877_v16 = vadd.f32 %v160_v1, %v159_v8  ;;  %v173_v19 = vadd.f32 %v172_v6, %v168_v11  ;;  %v177_v21 = vadd.f32 %v176_v10, %v171_v12  ;;  %v188_v22 = vmul.f32 %v141_v39, %v852_v52 }
  0x5d   :  { %v190_v23 = vmul.f32 %v143_v49, %v855_v55  ;;  %v162_v24 = vmul.f32 %v875_v15, %v875_v15  ;;  %v186_v28 = vsub.f32 %v184_v14, %v185_v17  ;;  %v192_v29 = vmul.f32 %v147_v50, %v860_v59 }
  0x5e   :  { %v163_v27 = vmul.f32 %v877_v16, %v877_v16  ;;  %v175_v33 = vsub.f32 %v173_v19, %v174_v9  ;;  %v179_v34 = vadd.f32 %v178_v13, %v177_v21  ;;  %v189_v36 = vadd.f32 %v188_v22, %v187_v18 }
  0x5f   :  { %v194_v37 = vmul.f32 %v147_v50, %v855_v55  ;;  %v191_v39 = vadd.f32 %v190_v23, %v186_v28  ;;  %v196_v41 = vmul.f32 %v143_v49, %v860_v59  ;;  %v213_v54 = vmul.f32 %v206_v31, %v834_v20 }
  0x60   :  { %v180_v43 = vmul.f32 %v175_v33, %v175_v33  ;;  %v181_v44 = vmul.f32 %v179_v34, %v179_v34  ;;  %v891_v56 = vmul.f32 %v139_v32, %v139_v32  ;;  %v214_v57 = vmul.f32 %v210_v38, %v836_v25 }
  0x61   :  { %v195_v47 = vadd.f32 %v194_v37, %v189_v36  ;;  %v216_v58 = vmul.f32 %v210_v38, %v834_v20  ;;  %v895_v60 = vadd.f32 %v163_v27, %v162_v24  ;;  %v193_v50 = vsub.f32 %v191_v39, %v192_v29 }
  0x62   :  { %v217_v61 = vmul.f32 %v206_v31, %v836_v25  ;;  %v219_v49 = vmul.f32 %v208_v42, %v838_v26  ;;  %v899_v62 = vmul.f32 %v203_v48, %v203_v48  ;;  %v215_v63 = vsub.f32 %v213_v54, %v214_v57 }
  0x63   :  { %v221_v0 = vmul.f32 %v212_v53, %v840_v30  ;;  %v223_v1 = vmul.f32 %v212_v53, %v838_v26  ;;  %v903_v2 = vadd.f32 %v181_v44, %v180_v43  ;;  %v197_v3 = vadd.f32 %v196_v41, %v195_v47  ;;  %v274_v47 = vld [vmem:[#allocation7 + $0x4] sm:$0x1] }
  0x64   :  { %v218_v4 = vadd.f32 %v217_v61, %v216_v58  ;;  %v225_v5 = vmul.f32 %v208_v42, %v840_v30  ;;  %v220_v6 = vadd.f32 %v219_v49, %v215_v63  ;;  %v232_v7 = vmul.f32 %v206_v31, %v842_v35  ;;  %v276_v63 = vld [vmem:[#allocation7 + $0xa] sm:$0x1] }
  0x65   :  { %v233_v8 = vmul.f32 %v210_v38, %v844_v40  ;;  %v235_v9 = vmul.f32 %v210_v38, %v842_v35  ;;  %v198_v10 = vmul.f32 %v193_v50, %v193_v50  ;;  %v236_v12 = vmul.f32 %v206_v31, %v844_v40  ;;  %v278_v50 = vld [vmem:[#allocation7 + $0x5] sm:$0x1] }
  0x66   :  { %v224_v11 = vadd.f32 %v223_v1, %v218_v4  ;;  %v238_v13 = vmul.f32 %v208_v42, %v846_v45  ;;  %v222_v14 = vsub.f32 %v220_v6, %v221_v0  ;;  %v240_v18 = vmul.f32 %v212_v53, %v848_v46  ;;  %v280_v6 = vld [vmem:[#allocation7 + $0xb] sm:$0x1] }
  0x67   :  { %v234_v17 = vsub.f32 %v232_v7, %v233_v8  ;;  %v242_v19 = vmul.f32 %v212_v53, %v846_v45  ;;  %v199_v21 = vmul.f32 %v197_v3, %v197_v3  ;;  %v237_v23 = vadd.f32 %v236_v12, %v235_v9 }
  0x68   :  { %v226_v22 = vadd.f32 %v225_v5, %v224_v11  ;;  %v244_v24 = vmul.f32 %v208_v42, %v848_v46  ;;  %v227_v27 = vmul.f32 %v222_v14, %v222_v14  ;;  %v251_v29 = vmul.f32 %v206_v31, %v850_v51 }
  0x69   :  { %v239_v28 = vadd.f32 %v238_v13, %v234_v17  ;;  %v252_v32 = vmul.f32 %v210_v38, %v852_v52  ;;  %v243_v34 = vadd.f32 %v242_v19, %v237_v23  ;;  %v254_v36 = vmul.f32 %v210_v38, %v850_v51 }
  0x6a   :  { %v228_v33 = vmul.f32 %v226_v22, %v226_v22  ;;  %v255_v37 = vmul.f32 %v206_v31, %v852_v52  ;;  %v257_v43 = vmul.f32 %v208_v42, %v855_v55  ;;  %v259_v44 = vmul.f32 %v212_v53, %v860_v59 }
  0x6b   :  { %v918_v39 = vsub.f32 %v239_v28, %v240_v18  ;;  %v253_v41 = vsub.f32 %v251_v29, %v252_v32  ;;  %v924_v54 = vadd.f32 %v244_v24, %v243_v34  ;;  %v261_v58 = vmul.f32 %v212_v53, %v855_v55  ;;  %v271_v53 = vld [vmem:[#allocation2 + $0x2] sm:$0x1] }
  0x6c   :  { %v922_v48 = vadd.f32 %v228_v33, %v227_v27  ;;  %v256_v57 = vadd.f32 %v255_v37, %v254_v36  ;;  %v929_v38 = vmul.f32 %v895_v60, %v891_v56  ;;  %v263_v49 = vmul.f32 %v208_v42, %v860_v59 }
  0x6d   :  { %v246_v31 = vmul.f32 %v918_v39, %v918_v39  ;;  %v258_v61 = vadd.f32 %v257_v43, %v253_v41  ;;  %v247_v1 = vmul.f32 %v924_v54, %v924_v54  ;;  %v281_v4 = vmul.f32 %v274_v47, %v834_v20 }
  0x6e   :  { %v230_v0 = vmul.f32 %v922_v48, %v899_v62  ;;  %v262_v3 = vadd.f32 %v261_v58, %v256_v57  ;;  %v183_v5 = vmul.f32 %v903_v2, %v891_v56  ;;  %v282_v7 = vmul.f32 %v278_v50, %v836_v25 }
  0x6f   :  { %v284_v8 = vmul.f32 %v278_v50, %v834_v20  ;;  %v285_v42 = vmul.f32 %v274_v47, %v836_v25  ;;  %v944_v9 = vadd.f32 %v199_v21, %v198_v10  ;;  %v260_v11 = vsub.f32 %v258_v61, %v259_v44 }
  0x70   :  { %v264_v12 = vadd.f32 %v263_v49, %v262_v3  ;;  %v287_v13 = vmul.f32 %v276_v63, %v838_v26  ;;  %v947_v14 = vmul.f32 %v271_v53, %v271_v53  ;;  %v283_v17 = vsub.f32 %v281_v4, %v282_v7 }
  0x71   :  { %v286_v18 = vadd.f32 %v285_v42, %v284_v8  ;;  %v289_v19 = vmul.f32 %v280_v6, %v840_v30  ;;  %v231_v22 = vadd.f32 %v230_v0, %v929_v38  ;;  %v951_v23 = vadd.f32 %v247_v1, %v246_v31 }
  0x72   :  { %v291_v20 = vmul.f32 %v280_v6, %v838_v26  ;;  %v293_v25 = vmul.f32 %v276_v63, %v840_v30  ;;  %v288_v10 = vadd.f32 %v287_v13, %v283_v17  ;;  %v300_v21 = vmul.f32 %v274_v47, %v842_v35 }
  0x73   :  { %v301_v24 = vmul.f32 %v278_v50, %v844_v40  ;;  %v303_v27 = vmul.f32 %v278_v50, %v842_v35  ;;  %v265_v28 = vmul.f32 %v260_v11, %v260_v11  ;;  %v266_v29 = vmul.f32 %v264_v12, %v264_v12 }
  0x74   :  { %v292_v32 = vadd.f32 %v291_v20, %v286_v18  ;;  %v304_v33 = vmul.f32 %v274_v47, %v844_v40  ;;  %v290_v34 = vsub.f32 %v288_v10, %v289_v19  ;;  %v306_v37 = vmul.f32 %v276_v63, %v846_v45 }
  0x75   :  { %v302_v36 = vsub.f32 %v300_v21, %v301_v24  ;;  %v308_v26 = vmul.f32 %v280_v6, %v848_v46  ;;  %v963_v30 = vmul.f32 %v951_v23, %v899_v62  ;;  %v310_v44 = vmul.f32 %v280_v6, %v846_v45 }
  0x76   :  { %v294_v41 = vadd.f32 %v293_v25, %v292_v32  ;;  %v305_v43 = vadd.f32 %v304_v33, %v303_v27  ;;  %v295_v35 = vmul.f32 %v290_v34, %v290_v34  ;;  %v312_v58 = vmul.f32 %v276_v63, %v848_v46 }
  0x77   :  { %v307_v57 = vadd.f32 %v306_v37, %v302_v36  ;;  %v319_v40 = vmul.f32 %v274_v47, %v850_v51  ;;  %v968_v31 = vadd.f32 %v266_v29, %v265_v28  ;;  %v320_v0 = vmul.f32 %v278_v50, %v852_v52 }
  0x78   :  { %v296_v61 = vmul.f32 %v294_v41, %v294_v41  ;;  %v311_v49 = vadd.f32 %v310_v44, %v305_v43  ;;  %v322_v3 = vmul.f32 %v278_v50, %v850_v51  ;;  %v323_v53 = vmul.f32 %v274_v47, %v852_v52 }
  0x79   :  { %v309_v1 = vsub.f32 %v307_v57, %v308_v26  ;;  %v325_v4 = vmul.f32 %v276_v63, %v855_v55  ;;  %v321_v8 = vsub.f32 %v319_v40, %v320_v0  ;;  %v327_v46 = vmul.f32 %v280_v6, %v860_v59 }
  0x7a   :  { %v974_v45 = vadd.f32 %v296_v61, %v295_v35  ;;  %v313_v7 = vadd.f32 %v312_v58, %v311_v49  ;;  %v324_v11 = vadd.f32 %v323_v53, %v322_v3  ;;  %v329_v12 = vmul.f32 %v280_v6, %v855_v55 }
  0x7b   :  { %v314_v42 = vmul.f32 %v309_v1, %v309_v1  ;;  %v331_v13 = vmul.f32 %v276_v63, %v860_v59  ;;  %v326_v50 = vadd.f32 %v325_v4, %v321_v8  ;;  %v250_v47 = vadd.f32 %v963_v30, %v183_v5 }
  0x7c   :  { %v298_v17 = vmul.f32 %v974_v45, %v947_v14  ;;  %v315_v51 = vmul.f32 %v313_v7, %v313_v7  ;;  %v330_v52 = vadd.f32 %v329_v12, %v324_v11  ;;  %v201_v25 = vmul.f32 %v944_v9, %v891_v56 }
  0x7d   :  { %v984_v20 = vsub.f32 %v326_v50, %v327_v46  ;;  %v268_v55 = vmul.f32 %v968_v31, %v899_v62 }
  0x7e   :  { %v299_v18 = vadd.f32 %v298_v17, %v231_v22  ;;  %v982_v19 = vadd.f32 %v315_v51, %v314_v42  ;;  %v990_v59 = vadd.f32 %v331_v13, %v330_v52 }
  0x7f   :  { %v333_v6 = vmul.f32 %v984_v20, %v984_v20  ;;  %v269_v24 = vadd.f32 %v268_v55, %v201_v25 }
  0x80   :  { %v317_v63 = vmul.f32 %v982_v19, %v947_v14  ;;  %v338_v5 = vadd.f32 1.0, %v299_v18  ;;  %v334_v22 = vmul.f32 %v990_v59, %v990_v59 }
  0x82   :  { %v318_v10 = vadd.f32 %v317_v63, %v250_v47  ;;  %v339_v21 = vsub.f32 %v338_v5, %v929_v38  ;;  %v999_v56 = vadd.f32 %v334_v22, %v333_v6  ;;  %573 = vrcp.f32 %v338_v5 }
  0x84   :  { %575 = vrcp.f32 %v339_v21  ;;  %v354_v62 = vadd.f32 1.0, %v318_v10  ;;  %v336_v27 = vmul.f32 %v999_v56, %v947_v14 }
  0x86   :  { %v355_v28 = vsub.f32 %v354_v62, %v963_v30  ;;  %v337_v29 = vadd.f32 %v336_v27, %v269_v24  ;;  %577 = vrcp.f32 %v354_v62 }
  0x88   :  { %579 = vrcp.f32 %v355_v28  ;;  %v370_v32 = vadd.f32 1.0, %v337_v29 }
  0x8a   :  { %v371_v33 = vsub.f32 %v370_v32, %v336_v27  ;;  %581 = vrcp.f32 %v370_v32 }
  0x8c   :  { %v574_v34 = vpop.eup %573  ;;  %583 = vrcp.f32 %v371_v33 }
  0x8d   :  { %v347_v43 = vmul.f32 %v574_v34, %v338_v5 }
  0x8e   :  { %v576_v36 = vpop.eup %575 }
  0x8f   :  { %v341_v37 = vmul.f32 %v576_v36, %v339_v21  ;;  %v348_v58 = vsub.f32 2.0, %v347_v43 }
  0x90   :  { %v578_v26 = vpop.eup %577 }
  0x91   :  { %v342_v41 = vsub.f32 2.0, %v341_v37  ;;  %v363_v61 = vmul.f32 %v578_v26, %v354_v62  ;;  %v349_v4 = vmul.f32 %v574_v34, %v348_v58 }
  0x92   :  { %v580_v44 = vpop.eup %579 }
  0x93   :  { %v343_v35 = vmul.f32 %v576_v36, %v342_v41  ;;  %v357_v57 = vmul.f32 %v580_v44, %v355_v28  ;;  %v364_v46 = vsub.f32 2.0, %v363_v61 }
  0x94   :  { %v582_v49 = vpop.eup %581 }
  0x95   :  { %v344_v14 = vmul.f32 %v343_v35, %v929_v38  ;;  %v358_v40 = vsub.f32 2.0, %v357_v57  ;;  %v379_v11 = vmul.f32 %v582_v49, %v370_v32  ;;  %v365_v50 = vmul.f32 %v578_v26, %v364_v46 }
  0x96   :  { %v584_v0 = vpop.eup %583 }
  0x97   :  { %v1005_v1 = vadd.f32 1.0, %v344_v14  ;;  %v359_v3 = vmul.f32 %v580_v44, %v358_v40  ;;  %530 = vst [vmem:[#allocation10 + $0x3] sm:$0x1] %v344_v14  ;;  %v373_v53 = vmul.f32 %v584_v0, %v371_v33  ;;  %v380_v18 = vsub.f32 2.0, %v379_v11 }
  0x99   :  { %v350_v7 = vmul.f32 0.5, %v1005_v1  ;;  %v360_v8 = vmul.f32 %v359_v3, %v963_v30  ;;  %v374_v42 = vsub.f32 2.0, %v373_v53  ;;  %vm465_vm9 = vcmp.eq.f32.partialorder %v1005_v1, inf }
  0x9a   :  { %vm467_vm12 = vcmp.eq.f32.partialorder %v1005_v1, 0.0 }
  0x9b   :  { %v351_v12 = vmul.f32 %v350_v7, %v929_v38  ;;  %v1010_v13 = vadd.f32 1.0, %v360_v8  ;;  %532 = vst [vmem:[#allocation10 + $0x4] sm:$0x1] %v360_v8  ;;  %v375_v17 = vmul.f32 %v584_v0, %v374_v42  ;;  %v381_v38 = vmul.f32 %v582_v49, %v380_v18 }
  0x9d   :  { %v352_v51 = vmul.f32 %v351_v12, %v349_v4  ;;  %v366_v52 = vmul.f32 0.5, %v1010_v13  ;;  %v376_v47 = vmul.f32 %v375_v17, %v336_v27  ;;  %vm487_vm10 = vcmp.eq.f32.partialorder %v1010_v13, inf }
  0x9e   :  { %vm489_vm13 = vcmp.eq.f32.partialorder %v1010_v13, 0.0 }
  0x9f   :  { %v353_v25 = vmul.f32 %v352_v51, %v349_v4  ;;  %v367_v55 = vmul.f32 %v366_v52, %v963_v30  ;;  %v1014_v63 = vadd.f32 1.0, %v376_v47  ;;  %534 = vst [vmem:[#allocation10 + $0x5] sm:$0x1] %v376_v47 }
  0xa1   :  { %v368_v6 = vmul.f32 %v367_v55, %v365_v50  ;;  %v386_v5 = vmul.f32 %v353_v25, %v1005_v1  ;;  %v382_v22 = vmul.f32 0.5, %v1014_v63  ;;  %v388_v62 = vmul.f32 %v353_v25, %v895_v60 }
  0xa2   :  { %v412_v28 = vmul.f32 %v353_v25, %v922_v48  ;;  %v436_v29 = vmul.f32 %v353_v25, %v974_v45  ;;  %vm509_vm11 = vcmp.eq.f32.partialorder %v1014_v63, inf  ;;  %vm511_vm14 = vcmp.eq.f32.partialorder %v1014_v63, 0.0 }
  0xa3   :  { %v369_v10 = vmul.f32 %v368_v6, %v365_v50  ;;  %v387_v21 = vmul.f32 %v386_v5, %v895_v60  ;;  %v383_v24 = vmul.f32 %v382_v22, %v336_v27 }
  0xa5   :  { %v389_v30 = vmul.f32 %v369_v10, %v903_v2  ;;  %v395_v32 = vmul.f32 0.5, %v387_v21  ;;  %v410_v33 = vmul.f32 %v369_v10, %v1010_v13  ;;  %v413_v34 = vmul.f32 %v369_v10, %v951_v23 }
  0xa6   :  { %v384_v36 = vmul.f32 %v383_v24, %v381_v38  ;;  %v437_v37 = vmul.f32 %v369_v10, %v982_v19 }
  0xa7   :  { %v390_v41 = vadd.f32 %v389_v30, %v388_v62  ;;  %v411_v27 = vmul.f32 %v410_v33, %v951_v23  ;;  %v414_v43 = vadd.f32 %v413_v34, %v412_v28  ;;  %585 = vrsqrt.f32 %v395_v32 }
  0xa8   :  { %v385_v26 = vmul.f32 %v384_v36, %v381_v38  ;;  %v438_v44 = vadd.f32 %v437_v37, %v436_v29  ;;  %vm398_vm3 = vcmp.eq.f32.partialorder %v395_v32, inf  ;;  %v401_v51 = vand.u32 2147483648, %v395_v32 }
  0xa9   :  { %v419_v14 = vmul.f32 0.5, %v411_v27  ;;  %vm400_vm5 = vcmp.eq.f32.partialorder %v395_v32, 0.0 }
  0xaa   :  { %v391_v35 = vmul.f32 %v385_v26, %v944_v9  ;;  %v415_v57 = vmul.f32 %v385_v26, %v968_v31  ;;  %v434_v58 = vmul.f32 %v385_v26, %v1014_v63  ;;  %v439_v40 = vmul.f32 %v385_v26, %v999_v56 }
  0xab   :  { %587 = vrsqrt.f32 %v419_v14  ;;  %vm422_vm4 = vcmp.eq.f32.partialorder %v419_v14, inf  ;;  %v425_v18 = vand.u32 2147483648, %v419_v14  ;;  %vm424_vm6 = vcmp.eq.f32.partialorder %v419_v14, 0.0 }
  0xac   :  { %v392_v61 = vadd.f32 %v391_v35, %v390_v41  ;;  %v416_v49 = vadd.f32 %v415_v57, %v414_v43  ;;  %v435_v0 = vmul.f32 %v434_v58, %v999_v56  ;;  %v440_v3 = vadd.f32 %v439_v40, %v438_v44 }
  0xae   :  { %vm393_vm0 = vcmp.gt.f32.partialorder %v392_v61, 0.0  ;;  %vm417_vm1 = vcmp.gt.f32.partialorder %v416_v49, 0.0  ;;  %vm441_vm2 = vcmp.gt.f32.partialorder %v440_v3, 0.0  ;;  %v443_v7 = vmul.f32 0.5, %v435_v0 }
  0xaf   :  { %v394_v53 = vsel %vm393_vm0, %v392_v61, 1.0  ;;  %v418_v4 = vsel %vm417_vm1, %v416_v49, 1.0  ;;  %v442_v8 = vsel %vm441_vm2, %v440_v3, 1.0 }
  0xb0   :  { %589 = vrcp.f32 %v394_v53  ;;  %vm446_vm7 = vcmp.eq.f32.partialorder %v443_v7, inf  ;;  %v449_v10 = vand.u32 2147483648, %v443_v7  ;;  %vm448_vm8 = vcmp.eq.f32.partialorder %v443_v7, 0.0 }
  0xb1   :  { %591 = vrcp.f32 %v418_v4  ;;  %v586_v46 = vpop.eup %585 }
  0xb2   :  { %593 = vrsqrt.f32 %v443_v7  ;;  %v397_v11 = vmul.f32 %v586_v46, %v395_v32 }
  0xb3   :  { %595 = vrcp.f32 %v442_v8 }
  0xb4   :  { %v399_v52 = vsel %vm398_vm3, %v395_v32, %v397_v11  ;;  %597 = vrsqrt.f32 %v1005_v1 }
  0xb5   :  { %v588_v42 = vpop.eup %587  ;;  %v402_v21 = vsel %vm400_vm5, %v401_v51, %v399_v52  ;;  %599 = vrsqrt.f32 %v1010_v13  ;;  %v490_v52 = vand.u32 2147483648, %v1010_v13 }
  0xb6   :  { %v421_v12 = vmul.f32 %v588_v42, %v419_v14  ;;  %601 = vrsqrt.f32 %v1014_v63 }
  0xb8   :  { %v423_v55 = vsel %vm422_vm4, %v419_v14, %v421_v12 }
  0xb9   :  { %v426_v29 = vsel %vm424_vm6, %v425_v18, %v423_v55  ;;  %v512_v18 = vand.u32 2147483648, %v1014_v63 }
  0xba   :  { %v590_v17 = vpop.eup %589 }
  0xbb   :  { %v592_v50 = vpop.eup %591  ;;  %v404_v47 = vmul.f32 %v590_v17, %v394_v53 }
  0xbc   :  { %v594_v25 = vpop.eup %593  ;;  %v428_v6 = vmul.f32 %v592_v50, %v418_v4 }
  0xbd   :  { %v596_v5 = vpop.eup %595  ;;  %v405_v38 = vsub.f32 2.0, %v404_v47  ;;  %v445_v22 = vmul.f32 %v594_v25, %v443_v7 }
  0xbe   :  { %v429_v24 = vsub.f32 2.0, %v428_v6  ;;  %v452_v62 = vmul.f32 %v596_v5, %v442_v8 }
  0xbf   :  { %v406_v28 = vmul.f32 %v590_v17, %v405_v38  ;;  %v447_v30 = vsel %vm446_vm7, %v443_v7, %v445_v22 }
  0xc0   :  { %v430_v33 = vmul.f32 %v592_v50, %v429_v24  ;;  %v453_v32 = vsub.f32 2.0, %v452_v62  ;;  %v450_v36 = vsel %vm448_vm8, %v449_v10, %v447_v30 }
  0xc1   :  { %v407_v34 = vmul.f32 %v406_v28, %v402_v21 }
  0xc2   :  { %v431_v37 = vmul.f32 %v430_v33, %v426_v29  ;;  %v454_v26 = vmul.f32 %v596_v5, %v453_v32 }
  0xc3   :  { %v408_v41 = vmin.f32 %v407_v34, 1.0 }
  0xc4   :  { %v432_v27 = vmin.f32 %v431_v37, 1.0  ;;  %v455_v43 = vmul.f32 %v454_v26, %v450_v36 }
  0xc5   :  { %v409_v44 = vmul.f32 %v408_v41, %v408_v41  ;;  %524 = vst [vmem:[#allocation10] sm:$0x1] %v408_v41 }
  0xc6   :  { %v433_v35 = vmul.f32 %v432_v27, %v432_v27  ;;  %526 = vst [vmem:[#allocation10 + $0x1] sm:$0x1] %v432_v27  ;;  %v456_v57 = vmin.f32 %v455_v43, 1.0 }
  0xc7   :  { %v458_v14 = vmul.f32 %v409_v44, %v895_v60  ;;  %v480_v58 = vmul.f32 %v409_v44, %v903_v2  ;;  %v502_v40 = vmul.f32 %v409_v44, %v944_v9  ;;  %v598_v2 = vpop.eup %597 }
  0xc8   :  { %v459_v61 = vmul.f32 %v433_v35, %v922_v48  ;;  %v481_v49 = vmul.f32 %v433_v35, %v951_v23  ;;  %v503_v0 = vmul.f32 %v433_v35, %v968_v31  ;;  %v457_v3 = vmul.f32 %v456_v57, %v456_v57  ;;  %528 = vst [vmem:[#allocation10 + $0x2] sm:$0x1] %v456_v57  ;;  %v600_v11 = vpop.eup %599 }
  0xc9   :  { %v602_v12 = vpop.eup %601  ;;  %v464_v31 = vmul.f32 %v598_v2, %v1005_v1 }
  0xca   :  { %v460_v53 = vadd.f32 %v459_v61, %v458_v14  ;;  %v461_v4 = vmul.f32 %v457_v3, %v974_v45  ;;  %v482_v7 = vadd.f32 %v481_v49, %v480_v58  ;;  %v483_v8 = vmul.f32 %v457_v3, %v982_v19 }
  0xcb   :  { %v504_v46 = vadd.f32 %v503_v0, %v502_v40  ;;  %v505_v60 = vmul.f32 %v457_v3, %v999_v56  ;;  %v486_v45 = vmul.f32 %v600_v11, %v1010_v13  ;;  %v508_v19 = vmul.f32 %v602_v12, %v1014_v63 }
  0xcc   :  { %v462_v42 = vadd.f32 %v461_v4, %v460_v53  ;;  %v484_v9 = vadd.f32 %v483_v8, %v482_v7  ;;  %v468_v56 = vand.u32 2147483648, %v1005_v1  ;;  %v466_v50 = vsel %vm465_vm9, %v1005_v1, %v464_v31 }
  0xcd   :  { %v506_v48 = vadd.f32 %v505_v60, %v504_v46  ;;  %v488_v47 = vsel %vm487_vm10, %v1010_v13, %v486_v45  ;;  %v510_v25 = vsel %vm509_vm11, %v1014_v63, %v508_v19 }
  0xce   :  { %v472_v23 = vadd.f32 1.0, %v462_v42  ;;  %v494_v17 = vadd.f32 1.0, %v484_v9  ;;  %v469_v55 = vsel %vm467_vm12, %v468_v56, %v466_v50  ;;  %v491_v6 = vsel %vm489_vm13, %v490_v52, %v488_v47 }
  0xcf   :  { %v516_v51 = vadd.f32 1.0, %v506_v48  ;;  %v513_v5 = vsel %vm511_vm14, %v512_v18, %v510_v25  ;;  %v470_v38 = vmul.f32 %v469_v55, %v408_v41  ;;  %v492_v10 = vmul.f32 %v491_v6, %v432_v27 }
  0xd0   :  { %603 = vrcp.f32 %v472_v23  ;;  %v514_v24 = vmul.f32 %v513_v5, %v456_v57 }
  0xd1   :  { %605 = vrcp.f32 %v494_v17  ;;  %v471_v29 = vmul.f32 0.70710677, %v470_v38  ;;  %v493_v33 = vmul.f32 0.70710677, %v492_v10 }
  0xd2   :  { %607 = vrcp.f32 %v516_v51  ;;  %v515_v36 = vmul.f32 0.70710677, %v514_v24 }
  0xda   :  { %v604_v22 = vpop.eup %603 }
  0xdb   :  { %v606_v21 = vpop.eup %605  ;;  %v474_v1 = vmul.f32 %v604_v22, %v472_v23 }
  0xdc   :  { %v608_v62 = vpop.eup %607  ;;  %v496_v28 = vmul.f32 %v606_v21, %v494_v17 }
  0xdd   :  { %v475_v30 = vsub.f32 2.0, %v474_v1  ;;  %v518_v13 = vmul.f32 %v608_v62, %v516_v51 }
  0xde   :  { %v497_v32 = vsub.f32 2.0, %v496_v28 }
  0xdf   :  { %v476_v34 = vmul.f32 %v604_v22, %v475_v30  ;;  %v519_v37 = vsub.f32 2.0, %v518_v13 }
  0xe0   :  { %v498_v63 = vmul.f32 %v606_v21, %v497_v32 }
  0xe1   :  { %v477_v26 = vmul.f32 %v476_v34, %v471_v29  ;;  %v520_v43 = vmul.f32 %v608_v62, %v519_v37 }
  0xe2   :  { %v499_v44 = vmul.f32 %v498_v63, %v493_v33 }
  0xe3   :  { %v478_v41 = vmul.f32 %v477_v26, %v875_v15  ;;  %v521_v27 = vmul.f32 %v520_v43, %v515_v36  ;;  %v479_v35 = vmul.f32 %v477_v26, %v877_v16 }
  0xe4   :  { %v500_v57 = vmul.f32 %v499_v44, %v918_v39  ;;  %v501_v14 = vmul.f32 %v499_v44, %v924_v54 }
  0xe5   :  { %536 = vst [vmem:[#allocation10 + $0x6] sm:$0x1] %v478_v41  ;;  %v522_v58 = vmul.f32 %v521_v27, %v984_v20  ;;  %542 = vst [vmem:[#allocation10 + $0x9] sm:$0x1] %v479_v35  ;;  %v523_v40 = vmul.f32 %v521_v27, %v990_v59 }
  0xe6   :  { %538 = vst [vmem:[#allocation10 + $0x7] sm:$0x1] %v500_v57  ;;  %544 = vst [vmem:[#allocation10 + $0xa] sm:$0x1] %v501_v14 }
  0xe7   :  { %540 = vst [vmem:[#allocation10 + $0x8] sm:$0x1] %v522_v58  ;;  %546 = vst [vmem:[#allocation10 + $0xb] sm:$0x1] %v523_v40 }
  0xe8   :  { %708 = shalt.err (!%p705_p8)
}
  0xe9   :  { %s709_s16 = scalar_lea.hbm %s1084_s4, 192 }
  0xea   :  { %p710_p9 = scmp.ne.s32.totalorder %s1084_s4, %s709_s16  ;;  %p713_p10 = scmp.lt.u32.totalorder %s709_s16, %s1084_s4 }
  0xec   :  { %p715_p11 = pnand %p713_p10, %p710_p9 }
  0xee   :  { %718 = shalt.err (!%p715_p11)
}
  0xef   :  { %558 = dma.vmem_to_hbm [thread:$0]  %s553_s1, 192, %s1084_s4, [#allocation4], %s729_s27, %s729_s27, %s730_s28  }
  0xf0   :  { %725 = dma.done.wait [#allocation4], 192  }
  0xf1   :  { %726 = vsyncadd [#allocation4], 4294967104 }
  0xf2   :  { %562 = vsyncpa [#allocation3], 1 }
  0xf3   :  { %563 = vsyncpa [#allocation6], 1 }
  0xf4   :  { %564 = vsyncpa [#allocation9], 1 }
  0xf5   :  { %565 = vsyncpa [#allocation4], 1 }

</bundles_post_ra>
